<compile_context>
chip_gen: v6e
topology: v6e:2x2x1
jax: 0.10.0
libtpu: 0.0.40
codegen_flags: <defaults>
</compile_context>

<pallas_src>
import jax
import jax.numpy as jnp
from jax.experimental import pallas as pl
from jax.experimental.pallas import tpu as pltpu

NEG_SLOPE = 0.01  # F.leaky_relu default negative_slope


def _lrelu(h):
    return jnp.where(h >= 0, h, NEG_SLOPE * h)


def _disc2_kernel(x_ref, v_ref,
                  wv_ref, bv_ref,
                  w1x_ref, w1v_ref, b1_ref,
                  w2_ref, b2_ref,
                  w3_ref, b3_ref,
                  w4_ref, b4_ref,
                  o_ref):
    """Entire Discriminator2 forward, VMEM-resident (no grid)."""
    x = x_ref[...]                                   # (B, in_dim)
    v = v_ref[...]                                   # (B, 1)

    # linear_v: Linear(1, 64)  ->  outer-product as a broadcast mul-add (VPU).
    affine_v = v * wv_ref[...] + bv_ref[...]         # (B,1)*(1,64)+(1,64) -> (B,64)

    # linear1 on cat([x, affine_v], dim=1), expressed as split-weight matmuls.
    h = (jnp.dot(x, w1x_ref[...], preferred_element_type=jnp.float32)
         + jnp.dot(affine_v, w1v_ref[...], preferred_element_type=jnp.float32)
         + b1_ref[...])
    h = _lrelu(h)

    h = jnp.dot(h, w2_ref[...], preferred_element_type=jnp.float32) + b2_ref[...]
    h = _lrelu(h)

    h = jnp.dot(h, w3_ref[...], preferred_element_type=jnp.float32) + b3_ref[...]
    h = _lrelu(h)

    # linear4: no activation.
    o_ref[...] = (jnp.dot(h, w4_ref[...], preferred_element_type=jnp.float32)
                  + b4_ref[...])


@jax.jit
def discriminator2_forward(x, v, params):
    B = x.shape[0]
    out_dim = params['w4'].shape[1]
    return pl.pallas_call(
        _disc2_kernel,
        out_shape=jax.ShapeDtypeStruct((B, out_dim), jnp.float32),
        compiler_params=pltpu.CompilerParams(vmem_limit_bytes=32 * 1024 * 1024),
    )(x, v,
      params['wv'], params['bv'],
      params['w1x'], params['w1v'], params['b1'],
      params['w2'], params['b2'],
      params['w3'], params['b3'],
      params['w4'], params['b4'])


# ------------------------- deterministic init (matches weights_init) ----------

def kaiming_uniform(key, shape, fan_in):
    # nn.init.kaiming_uniform_(a=0, mode='fan_in', nonlinearity='leaky_relu')
    gain = jnp.sqrt(2.0)
    bound = gain * jnp.sqrt(3.0 / fan_in)
    return jax.random.uniform(key, shape, jnp.float32, -bound, bound)


def init_discriminator2_params(key, input_dim=8 * 6 * 2, output=1, affine_dim=64):
    k = jax.random.split(key, 5)

    def lin(kk, n_in, n_out):
        # PyTorch Linear weight is (out, in); store pre-transposed (in, out).
        w = kaiming_uniform(kk, (n_out, n_in), fan_in=n_in).T
        b = jnp.full((1, n_out), 0.01, jnp.float32)
        return w, b

    wv, bv = lin(k[0], 1, affine_dim)                        # (1, 64), (1, 64)
    w1, b1 = lin(k[1], input_dim + affine_dim, 512)          # (160, 512)
    w2, b2 = lin(k[2], 512, 512)
    w3, b3 = lin(k[3], 512, 256)
    w4, b4 = lin(k[4], 256, output)

    return {
        'wv': wv, 'bv': bv,
        # split linear1 weights along K for the in-kernel concat-free matmul
        'w1x': w1[:input_dim], 'w1v': w1[input_dim:], 'b1': b1,
        'w2': w2, 'b2': b2,
        'w3': w3, 'b3': b3,
        'w4': w4, 'b4': b4,
    }


# ------------------------- pure-JAX reference ---------------------------------

def reference_forward(x, v, params):
    affine_v = v * params['wv'] + params['bv']
    h = jnp.concatenate([x, affine_v], axis=1)
    w1 = jnp.concatenate([params['w1x'], params['w1v']], axis=0)
    h = jax.nn.leaky_relu(h @ w1 + params['b1'], NEG_SLOPE)
    h = jax.nn.leaky_relu(h @ params['w2'] + params['b2'], NEG_SLOPE)
    h = jax.nn.leaky_relu(h @ params['w3'] + params['b3'], NEG_SLOPE)
    return h @ params['w4'] + params['b4']


if __name__ == "__main__":
    key = jax.random.PRNGKey(0)
    kx, kv, kp = jax.random.split(key, 3)

    B = 8                      # sublane-aligned small batch
    input_dim = 8 * 6 * 2      # 96, as in the PyTorch default
    x = jax.random.normal(kx, (B, input_dim), jnp.float32)
    v = jax.random.normal(kv, (B, 1), jnp.float32)
    params = init_discriminator2_params(kp, input_dim=input_dim, output=1)

    out = jax.block_until_ready(discriminator2_forward(x, v, params))
    assert out.shape == (B, 1), out.shape
    assert bool(jnp.all(jnp.isfinite(out)))

    ref = reference_forward(x, v, params)
    assert bool(jnp.allclose(out, ref, atol=1e-4, rtol=1e-4)), (out, ref)

    print("KERNEL_OK")
</pallas_src>

<mosaic_0001>
module attributes {stable_mosaic.version = 11 : i64} {
  func.func @_disc2_kernel(%arg0: memref<8x96xf32, #tpu.memory_space<vmem>>, %arg1: memref<8x1xf32, #tpu.memory_space<vmem>>, %arg2: memref<1x64xf32, #tpu.memory_space<vmem>>, %arg3: memref<1x64xf32, #tpu.memory_space<vmem>>, %arg4: memref<96x512xf32, #tpu.memory_space<vmem>>, %arg5: memref<64x512xf32, #tpu.memory_space<vmem>>, %arg6: memref<1x512xf32, #tpu.memory_space<vmem>>, %arg7: memref<512x512xf32, #tpu.memory_space<vmem>>, %arg8: memref<1x512xf32, #tpu.memory_space<vmem>>, %arg9: memref<512x256xf32, #tpu.memory_space<vmem>>, %arg10: memref<1x256xf32, #tpu.memory_space<vmem>>, %arg11: memref<256x1xf32, #tpu.memory_space<vmem>>, %arg12: memref<1x1xf32, #tpu.memory_space<vmem>>, %arg13: memref<8x1xf32, #tpu.memory_space<vmem>>) attributes {dimension_semantics = [], scalar_prefetch = 0 : i64, scratch_operands = 0 : i64, tpu.core_type = #tpu.core_type<tc>} {
    %c0 = arith.constant 0 : index
    %c0_0 = arith.constant 0 : index
    %0 = vector.load %arg0[%c0, %c0_0] : memref<8x96xf32, #tpu.memory_space<vmem>>, vector<8x96xf32>
    %c0_1 = arith.constant 0 : index
    %c0_2 = arith.constant 0 : index
    %1 = vector.load %arg1[%c0_1, %c0_2] : memref<8x1xf32, #tpu.memory_space<vmem>>, vector<8x1xf32>
    %c0_3 = arith.constant 0 : index
    %c0_4 = arith.constant 0 : index
    %2 = vector.load %arg2[%c0_3, %c0_4] : memref<1x64xf32, #tpu.memory_space<vmem>>, vector<1x64xf32>
    %3 = vector.broadcast %1 : vector<8x1xf32> to vector<8x64xf32>
    %4 = vector.broadcast %2 : vector<1x64xf32> to vector<8x64xf32>
    %5 = arith.mulf %3, %4 : vector<8x64xf32>
    %c0_5 = arith.constant 0 : index
    %c0_6 = arith.constant 0 : index
    %6 = vector.load %arg3[%c0_5, %c0_6] : memref<1x64xf32, #tpu.memory_space<vmem>>, vector<1x64xf32>
    %7 = vector.broadcast %6 : vector<1x64xf32> to vector<8x64xf32>
    %8 = arith.addf %5, %7 : vector<8x64xf32>
    %c0_7 = arith.constant 0 : index
    %c0_8 = arith.constant 0 : index
    %9 = vector.load %arg4[%c0_7, %c0_8] : memref<96x512xf32, #tpu.memory_space<vmem>>, vector<96x512xf32>
    %cst = arith.constant dense<0.000000e+00> : vector<8x512xf32>
    %10 = tpu.matmul %0, %9, %cst {dimension_numbers = #tpu.dot_dimension_numbers<[1], [0], [0], [1], [0, 0, 1, 1], [], []>} : vector<8x96xf32>, vector<96x512xf32>, vector<8x512xf32> -> vector<8x512xf32>
    %c0_9 = arith.constant 0 : index
    %c0_10 = arith.constant 0 : index
    %11 = vector.load %arg5[%c0_9, %c0_10] : memref<64x512xf32, #tpu.memory_space<vmem>>, vector<64x512xf32>
    %cst_11 = arith.constant dense<0.000000e+00> : vector<8x512xf32>
    %12 = tpu.matmul %8, %11, %cst_11 {dimension_numbers = #tpu.dot_dimension_numbers<[1], [0], [0], [1], [0, 0, 1, 1], [], []>} : vector<8x64xf32>, vector<64x512xf32>, vector<8x512xf32> -> vector<8x512xf32>
    %13 = arith.addf %10, %12 : vector<8x512xf32>
    %c0_12 = arith.constant 0 : index
    %c0_13 = arith.constant 0 : index
    %14 = vector.load %arg6[%c0_12, %c0_13] : memref<1x512xf32, #tpu.memory_space<vmem>>, vector<1x512xf32>
    %15 = vector.broadcast %14 : vector<1x512xf32> to vector<8x512xf32>
    %16 = arith.addf %13, %15 : vector<8x512xf32>
    %cst_14 = arith.constant 0.000000e+00 : f32
    %17 = vector.broadcast %cst_14 : f32 to vector<8x512xf32>
    %18 = arith.cmpf oge, %16, %17 : vector<8x512xf32>
    %cst_15 = arith.constant 0.00999999977 : f32
    %19 = vector.broadcast %cst_15 : f32 to vector<8x512xf32>
    %20 = arith.mulf %19, %16 : vector<8x512xf32>
    %21 = arith.select %18, %16, %20 : vector<8x512xi1>, vector<8x512xf32>
    %c0_16 = arith.constant 0 : index
    %c0_17 = arith.constant 0 : index
    %22 = vector.load %arg7[%c0_16, %c0_17] : memref<512x512xf32, #tpu.memory_space<vmem>>, vector<512x512xf32>
    %cst_18 = arith.constant dense<0.000000e+00> : vector<8x512xf32>
    %23 = tpu.matmul %21, %22, %cst_18 {dimension_numbers = #tpu.dot_dimension_numbers<[1], [0], [0], [1], [0, 0, 1, 1], [], []>} : vector<8x512xf32>, vector<512x512xf32>, vector<8x512xf32> -> vector<8x512xf32>
    %c0_19 = arith.constant 0 : index
    %c0_20 = arith.constant 0 : index
    %24 = vector.load %arg8[%c0_19, %c0_20] : memref<1x512xf32, #tpu.memory_space<vmem>>, vector<1x512xf32>
    %25 = vector.broadcast %24 : vector<1x512xf32> to vector<8x512xf32>
    %26 = arith.addf %23, %25 : vector<8x512xf32>
    %cst_21 = arith.constant 0.000000e+00 : f32
    %27 = vector.broadcast %cst_21 : f32 to vector<8x512xf32>
    %28 = arith.cmpf oge, %26, %27 : vector<8x512xf32>
    %cst_22 = arith.constant 0.00999999977 : f32
    %29 = vector.broadcast %cst_22 : f32 to vector<8x512xf32>
    %30 = arith.mulf %29, %26 : vector<8x512xf32>
    %31 = arith.select %28, %26, %30 : vector<8x512xi1>, vector<8x512xf32>
    %c0_23 = arith.constant 0 : index
    %c0_24 = arith.constant 0 : index
    %32 = vector.load %arg9[%c0_23, %c0_24] : memref<512x256xf32, #tpu.memory_space<vmem>>, vector<512x256xf32>
    %cst_25 = arith.constant dense<0.000000e+00> : vector<8x256xf32>
    %33 = tpu.matmul %31, %32, %cst_25 {dimension_numbers = #tpu.dot_dimension_numbers<[1], [0], [0], [1], [0, 0, 1, 1], [], []>} : vector<8x512xf32>, vector<512x256xf32>, vector<8x256xf32> -> vector<8x256xf32>
    %c0_26 = arith.constant 0 : index
    %c0_27 = arith.constant 0 : index
    %34 = vector.load %arg10[%c0_26, %c0_27] : memref<1x256xf32, #tpu.memory_space<vmem>>, vector<1x256xf32>
    %35 = vector.broadcast %34 : vector<1x256xf32> to vector<8x256xf32>
    %36 = arith.addf %33, %35 : vector<8x256xf32>
    %cst_28 = arith.constant 0.000000e+00 : f32
    %37 = vector.broadcast %cst_28 : f32 to vector<8x256xf32>
    %38 = arith.cmpf oge, %36, %37 : vector<8x256xf32>
    %cst_29 = arith.constant 0.00999999977 : f32
    %39 = vector.broadcast %cst_29 : f32 to vector<8x256xf32>
    %40 = arith.mulf %39, %36 : vector<8x256xf32>
    %41 = arith.select %38, %36, %40 : vector<8x256xi1>, vector<8x256xf32>
    %c0_30 = arith.constant 0 : index
    %c0_31 = arith.constant 0 : index
    %42 = vector.load %arg11[%c0_30, %c0_31] : memref<256x1xf32, #tpu.memory_space<vmem>>, vector<256x1xf32>
    %cst_32 = arith.constant dense<0.000000e+00> : vector<8x1xf32>
    %43 = tpu.matmul %41, %42, %cst_32 {dimension_numbers = #tpu.dot_dimension_numbers<[1], [0], [0], [1], [0, 0, 1, 1], [], []>} : vector<8x256xf32>, vector<256x1xf32>, vector<8x1xf32> -> vector<8x1xf32>
    %c0_33 = arith.constant 0 : index
    %c0_34 = arith.constant 0 : index
    %44 = vector.load %arg12[%c0_33, %c0_34] : memref<1x1xf32, #tpu.memory_space<vmem>>, vector<1x1xf32>
    %45 = vector.broadcast %44 : vector<1x1xf32> to vector<8x1xf32>
    %46 = arith.addf %43, %45 : vector<8x1xf32>
    %c0_35 = arith.constant 0 : index
    %c0_36 = arith.constant 0 : index
    %47 = vector.load %arg13[%c0_35, %c0_36] : memref<8x1xf32, #tpu.memory_space<vmem>>, vector<8x1xf32>
    tpu.vector_store %arg13[%c0_35, %c0_36], %46 {strides = array<i32>} : memref<8x1xf32, #tpu.memory_space<vmem>>, vector<8x1xf32>,
    return
  }
}

</mosaic_0001>

<bundles_post_ra>
// kernel: discriminator2_forward.1
= control target key start
LH: loop header
LB: loop body
LE: loop exit
PB: predicated region body
PF: predicated region fallthrough
CT: control target
= control target key end

     0   :  { %s1972_s0 = inlined_call_operand.vmem [shape: f32[8,96], index: 0, kind: input, shape index: {}]   ;;  %s1973_s1 = inlined_call_operand.vmem [shape: f32[8,1], index: 1, kind: input, shape index: {}]   ;;  %s1974_s2 = inlined_call_operand.vmem [shape: f32[1,64], index: 2, kind: input, shape index: {}]   ;;  %s1975_s3 = inlined_call_operand.vmem [shape: f32[1,64], index: 3, kind: input, shape index: {}]   ;;  %s1976_s4 = inlined_call_operand.hbm [shape: f32[96,512], index: 4, kind: input, shape index: {}]   ;;  %s1977_s5 = inlined_call_operand.vmem [shape: f32[64,512], index: 5, kind: input, shape index: {}]   ;;  %s1978_s6 = inlined_call_operand.vmem [shape: f32[1,512], index: 6, kind: input, shape index: {}]   ;;  %s1979_s7 = inlined_call_operand.hbm [shape: f32[512,512], index: 7, kind: input, shape index: {}]   ;;  %s1980_s8 = inlined_call_operand.vmem [shape: f32[1,512], index: 8, kind: input, shape index: {}]   ;;  %s1981_s9 = inlined_call_operand.hbm [shape: f32[512,256], index: 9, kind: input, shape index: {}]   ;;  %s1982_s10 = inlined_call_operand.vmem [shape: f32[1,256], index: 10, kind: input, shape index: {}]   ;;  %s1983_s11 = inlined_call_operand.vmem [shape: f32[256,1], index: 11, kind: input, shape index: {}]   ;;  %s1984_s12 = inlined_call_operand.<no memory space> [shape: f32[1,1], index: 12, kind: input, shape index: {}]   ;;  %s1985_s13 = inlined_call_operand.vmem [shape: f32[8,1], index: 13, kind: output, shape index: {}]  }
   0x1   :  { %v18_v0 = vstv %s1984_s12 }
   0x2   :  { %19 = vst [vmem:[#allocation2] sm:$0x1] %v18_v0 }
   0x3   :  { %20 = vsyncpa [#allocation4], 0 }
   0x4   :  { %21 = vsyncpa [#allocation6], 0  ;;  %s1615_s27 = smov [#allocation5]   ;;  %s1616_s29 = smov [#allocation3]  }
   0x5   :  { %s51_s28 = sshll.u32 %s1615_s27, 4  ;;  %s35_s30 = sshll.u32 %s1616_s29, 4  ;;  %s52_s28 = int_to_ptr.vmem [resolvable:$true] %s51_s28  ;;  %s36_s30 = int_to_ptr.vmem [resolvable:$true] %s35_s30 }
   0x6   :  { %s1559_s14 = scalar_lea.vmem %s52_s28, 32768  ;;  %p1564_p1 = scmp.lt.s32.totalorder %s52_s28, %s52_s28 }
   0x7   :  { %p1560_p0 = scmp.ne.s32.totalorder %s52_s28, %s1559_s14  ;;  %p1565_p2 = scmp.lt.s32.totalorder %s1559_s14, %s1559_s14 }
   0x9   :  { %p1566_p3 = por %p1565_p2, %p1564_p1 }
   0xb   :  { %p1567_p4 = pnand %p1566_p3, %p1560_p0 }
   0xd   :  { %1570 = shalt.err (!%p1567_p4)
}
   0xe   :  { %s1617_s15 = smov 512   ;;  %s1618_s16 = smov 32  }
   0xf   :  { %57 = dma.hbm_to_vmem [thread:$0]  %s1979_s7, 32768, %s52_s28, [#allocation6], %s1617_s15, %s1617_s15, %s1618_s16  }
  0x10   :  { %s1579_s18 = scalar_lea.vmem %s36_s30, 6144  ;;  %p1584_p6 = scmp.lt.s32.totalorder %s36_s30, %s36_s30 }
  0x11   :  { %p1580_p5 = scmp.ne.s32.totalorder %s36_s30, %s1579_s18  ;;  %p1585_p7 = scmp.lt.s32.totalorder %s1579_s18, %s1579_s18 }
  0x13   :  { %p1586_p8 = por %p1585_p7, %p1584_p6 }
  0x15   :  { %p1587_p9 = pnand %p1586_p8, %p1580_p5 }
  0x17   :  { %1590 = shalt.err (!%p1587_p9)
}
  0x18   :  { %41 = dma.hbm_to_vmem [thread:$0]  %s1976_s4, 6144, %s36_s30, [#allocation4], %s1617_s15, %s1617_s15, %s1618_s16  }
  0x19   :  { %s1619_s21 = smov [#allocation7]  }
  0x1a   :  { %s65_s22 = sshll.u32 %s1619_s21, 4  ;;  %s66_s22 = int_to_ptr.vmem [resolvable:$true] %s65_s22 }
  0x1b   :  { %s1599_s23 = scalar_lea.vmem %s66_s22, 16384  ;;  %p1604_p11 = scmp.lt.s32.totalorder %s66_s22, %s66_s22 }
  0x1c   :  { %p1600_p10 = scmp.ne.s32.totalorder %s66_s22, %s1599_s23  ;;  %p1605_p12 = scmp.lt.s32.totalorder %s1599_s23, %s1599_s23 }
  0x1e   :  { %p1606_p13 = por %p1605_p12, %p1604_p11 }
  0x20   :  { %p1607_p0 = pnand %p1606_p13, %p1600_p10 }
  0x22   :  { %1610 = shalt.err (!%p1607_p0)
}
  0x23   :  { %s1620_s7 = smov 256   ;;  %s1621_s24 = smov 16  }
  0x24   :  { %71 = dma.hbm_to_vmem [thread:$0]  %s1981_s9, 16384, %s66_s22, [#allocation6], %s1620_s7, %s1620_s7, %s1621_s24  }
  0x25   :  { %1611 = dma.done.wait [#allocation4], 6144  }
  0x26   :  { %1612 = vsyncadd [#allocation4], 4294961152 }
  0x27   :  { %1613 = dma.done.wait [#allocation6], 49152  }
  0x28   :  { %1614 = vsyncadd [#allocation6], 4294918144  ;;  %v1622_v1 = vmov 0   ;;  %v88_v2 = vld [vmem:[%s1973_s1] sm:$0xff]  ;;  %v155_v3 = vld [vmem:[#allocation3 + $0x168] sm:$0xff]  ;;  %v1623_v5 = vmov 0.0  }
  0x29   :  { %1550 = vset.pattern.permute.xlu0 %v1622_v1  ;;  %v154_v4 = vld [vmem:[#allocation3 + $0x160] sm:$0xff]  ;;  %258 = vmatprep.mubr.f32.mxu1 %v1623_v5  ;;  %v151_v6 = vld [vmem:[#allocation3 + $0x148] sm:$0xff]  ;;  %v189_v39 = vld [vmem:[%s1977_s5 + $0xf8] sm:$0xff]  ;;  %vm336_vm0 = vcmask 785408   ;;  %vm190_vm1 = vcmask 523264   ;;  %vm1491_vm12 = vcmask 7168  }
  0x2a   :  { %404 = vmatprep.mubr.f32.mxu0 %v1623_v5  ;;  %92 = vperm.xlu0 %1550, %v88_v2   ;;  %v150_v7 = vld [vmem:[#allocation3 + $0x140] sm:$0xff]  ;;  %v147_v8 = vld [vmem:[#allocation3 + $0x128] sm:$0xff] }
  0x2b   :  { %348 = vmatprep.subr.mxu0 %v155_v3  ;;  %v187_v9 = vld [vmem:[%s1977_s5 + $0xe8] sm:$0xff]  ;;  %v186_v11 = vld [vmem:[%s1977_s5 + $0xe0] sm:$0xff] }
  0x2c   :  { %349 = vmatpush1.msra.mxu0 %v154_v4  ;;  %v146_v10 = vld [vmem:[#allocation3 + $0x120] sm:$0xff]  ;;  %210 = vmatprep.subr.mxu1 %v187_v9  ;;  %v143_v12 = vld [vmem:[#allocation3 + $0x108] sm:$0xff] }
  0x2d   :  { %350 = vmatprep.subr.mxu0 %v151_v6  ;;  %211 = vmatpush1.msra.mxu1 %v186_v11  ;;  %v183_v13 = vld [vmem:[%s1977_s5 + $0xc8] sm:$0xff]  ;;  %v182_v14 = vld [vmem:[%s1977_s5 + $0xc0] sm:$0xff] }
  0x2e   :  { %351 = vmatpush1.msra.mxu0 %v150_v7  ;;  %v142_v15 = vld [vmem:[#allocation3 + $0x100] sm:$0xff]  ;;  %212 = vmatprep.subr.mxu1 %v183_v13  ;;  %v139_v17 = vld [vmem:[#allocation3 + $0xe8] sm:$0xff] }
  0x2f   :  { %352 = vmatprep.subr.mxu0 %v147_v8  ;;  %v179_v16 = vld [vmem:[%s1977_s5 + $0xa8] sm:$0xff]  ;;  %213 = vmatpush1.msra.mxu1 %v182_v14  ;;  %v178_v18 = vld [vmem:[%s1977_s5 + $0xa0] sm:$0xff] }
  0x30   :  { %353 = vmatpush1.msra.mxu0 %v146_v10  ;;  %v175_v19 = vld [vmem:[%s1977_s5 + $0x88] sm:$0xff]  ;;  %214 = vmatprep.subr.mxu1 %v179_v16  ;;  %v174_v21 = vld [vmem:[%s1977_s5 + $0x80] sm:$0xff] }
  0x31   :  { %354 = vmatprep.subr.mxu0 %v143_v12  ;;  %v138_v20 = vld [vmem:[#allocation3 + $0xe0] sm:$0xff]  ;;  %v135_v22 = vld [vmem:[#allocation3 + $0xc8] sm:$0xff]  ;;  %215 = vmatpush1.msra.mxu1 %v178_v18 }
  0x32   :  { %355 = vmatpush1.msra.mxu0 %v142_v15  ;;  %v171_v23 = vld [vmem:[%s1977_s5 + $0x68] sm:$0xff]  ;;  %216 = vmatprep.subr.mxu1 %v175_v19  ;;  %v170_v25 = vld [vmem:[%s1977_s5 + $0x60] sm:$0xff] }
  0x33   :  { %356 = vmatprep.subr.mxu0 %v139_v17  ;;  %v134_v24 = vld [vmem:[#allocation3 + $0xc0] sm:$0xff]  ;;  %v131_v26 = vld [vmem:[#allocation3 + $0xa8] sm:$0xff]  ;;  %217 = vmatpush1.msra.mxu1 %v174_v21 }
  0x34   :  { %357 = vmatpush1.msra.mxu0 %v138_v20  ;;  %v167_v27 = vld [vmem:[%s1977_s5 + $0x48] sm:$0xff]  ;;  %218 = vmatprep.subr.mxu1 %v171_v23  ;;  %v166_v29 = vld [vmem:[%s1977_s5 + $0x40] sm:$0xff] }
  0x35   :  { %358 = vmatprep.subr.mxu0 %v135_v22  ;;  %v130_v28 = vld [vmem:[#allocation3 + $0xa0] sm:$0xff]  ;;  %v127_v30 = vld [vmem:[#allocation3 + $0x88] sm:$0xff]  ;;  %219 = vmatpush1.msra.mxu1 %v170_v25 }
  0x36   :  { %359 = vmatpush1.msra.mxu0 %v134_v24  ;;  %v163_v31 = vld [vmem:[%s1977_s5 + $0x28] sm:$0xff]  ;;  %220 = vmatprep.subr.mxu1 %v167_v27  ;;  %v162_v33 = vld [vmem:[%s1977_s5 + $0x20] sm:$0xff] }
  0x37   :  { %360 = vmatprep.subr.mxu0 %v131_v26  ;;  %v126_v32 = vld [vmem:[#allocation3 + $0x80] sm:$0xff]  ;;  %v123_v34 = vld [vmem:[#allocation3 + $0x68] sm:$0xff]  ;;  %221 = vmatpush1.msra.mxu1 %v166_v29 }
  0x38   :  { %361 = vmatpush1.msra.mxu0 %v130_v28  ;;  %v159_v35 = vld [vmem:[%s1977_s5 + $0x8] sm:$0xff]  ;;  %222 = vmatprep.subr.mxu1 %v163_v31  ;;  %v158_v37 = vld [vmem:[%s1977_s5] sm:$0xff] }
  0x39   :  { %362 = vmatprep.subr.mxu0 %v127_v30  ;;  %v122_v36 = vld [vmem:[#allocation3 + $0x60] sm:$0xff]  ;;  %v119_v38 = vld [vmem:[#allocation3 + $0x48] sm:$0xff]  ;;  %223 = vmatpush1.msra.mxu1 %v162_v33 }
  0x3a   :  { %363 = vmatpush1.msra.mxu0 %v126_v32  ;;  %v118_v40 = vld [vmem:[#allocation3 + $0x40] sm:$0xff]  ;;  %224 = vmatprep.subr.mxu1 %v159_v35  ;;  %v115_v41 = vld [vmem:[#allocation3 + $0x28] sm:$0xff] }
  0x3b   :  { %364 = vmatprep.subr.mxu0 %v123_v34  ;;  %225 = vmatpush1.msra.mxu1 %v158_v37  ;;  %v114_v42 = vld [vmem:[#allocation3 + $0x20] sm:$0xff]  ;;  %v111_v43 = vld [vmem:[#allocation3 + $0x8] sm:$0xff]  ;;  %v1499_v37 = vld [vmem:[%s1974_s2] ss:$0 sm:$0xff] }
  0x3c   :  { %365 = vmatpush1.msra.mxu0 %v122_v36  ;;  %281 = vmatprep.subr.mxu1 %v189_v39  ;;  %v110_v44 = vld [vmem:[#allocation3] sm:$0xff]  ;;  %v581_v46 = vld [vmem:[#allocation5 + $0x1e8] sm:$0xff] }
  0x3d   :  { %366 = vmatprep.subr.mxu0 %v119_v38  ;;  %v1765_v45 = vld [vmem:[%s1972_s0] sm:$0xff]  ;;  %v577_v48 = vld [vmem:[#allocation5 + $0x1c8] sm:$0xff] }
  0x3e   :  { %367 = vmatpush1.msra.mxu0 %v118_v40  ;;  %v580_v47 = vld [vmem:[#allocation5 + $0x1e0] sm:$0xff]  ;;  %v573_v50 = vld [vmem:[#allocation5 + $0x1a8] sm:$0xff]  ;;  %v1500_v38 = vld [vmem:[%s1975_s3] ss:$0 sm:$0xff] }
  0x3f   :  { %368 = vmatprep.subr.mxu0 %v115_v41  ;;  %v576_v49 = vld [vmem:[#allocation5 + $0x1c0] sm:$0xff]  ;;  %v569_v52 = vld [vmem:[#allocation5 + $0x188] sm:$0xff] }
  0x40   :  { %369 = vmatpush1.msra.mxu0 %v114_v42  ;;  %v572_v51 = vld [vmem:[#allocation5 + $0x1a0] sm:$0xff]  ;;  %v565_v54 = vld [vmem:[#allocation5 + $0x168] sm:$0xff] }
  0x41   :  { %370 = vmatprep.subr.mxu0 %v111_v43  ;;  %v568_v53 = vld [vmem:[#allocation5 + $0x180] sm:$0xff]  ;;  %v561_v56 = vld [vmem:[#allocation5 + $0x148] sm:$0xff]  ;;  %v185_v43 = vld [vmem:[%s1977_s5 + $0xd8] sm:$0xff] }
  0x42   :  { %371 = vmatpush1.msra.mxu0 %v110_v44  ;;  %v564_v55 = vld [vmem:[#allocation5 + $0x160] sm:$0xff]  ;;  %v557_v58 = vld [vmem:[#allocation5 + $0x128] sm:$0xff] }
  0x43   :  { %1503 = vmatmul.mubr.msk.f32.vlgmr.msra.gmra.mxu0 %vm336_vm0, %v1765_v45  ;;  %798 = vmatprep.subr.mxu0 %v581_v46  ;;  %v560_v57 = vld [vmem:[#allocation5 + $0x140] sm:$0xff]  ;;  %v553_v60 = vld [vmem:[#allocation5 + $0x108] sm:$0xff]  ;;  %v181_v46 = vld [vmem:[%s1977_s5 + $0xb8] sm:$0xff] }
  0x44   :  { %799 = vmatpush1.msra.mxu0 %v580_v47  ;;  %v556_v59 = vld [vmem:[#allocation5 + $0x120] sm:$0xff]  ;;  %v549_v62 = vld [vmem:[#allocation5 + $0xe8] sm:$0xff] }
  0x45   :  { %800 = vmatprep.subr.mxu0 %v577_v48  ;;  %v552_v61 = vld [vmem:[#allocation5 + $0x100] sm:$0xff]  ;;  %v545_v0 = vld [vmem:[#allocation5 + $0xc8] sm:$0xff]  ;;  %v177_v48 = vld [vmem:[%s1977_s5 + $0x98] sm:$0xff] }
  0x46   :  { %801 = vmatpush1.msra.mxu0 %v576_v49  ;;  %v548_v63 = vld [vmem:[#allocation5 + $0xe0] sm:$0xff]  ;;  %v541_v2 = vld [vmem:[#allocation5 + $0xa8] sm:$0xff] }
  0x47   :  { %802 = vmatprep.subr.mxu0 %v573_v50  ;;  %v544_v1 = vld [vmem:[#allocation5 + $0xc0] sm:$0xff]  ;;  %v537_v4 = vld [vmem:[#allocation5 + $0x88] sm:$0xff]  ;;  %v173_v50 = vld [vmem:[%s1977_s5 + $0x78] sm:$0xff] }
  0x48   :  { %803 = vmatpush1.msra.mxu0 %v572_v51  ;;  %v540_v3 = vld [vmem:[#allocation5 + $0xa0] sm:$0xff]  ;;  %v533_v7 = vld [vmem:[#allocation5 + $0x68] sm:$0xff] }
  0x49   :  { %804 = vmatprep.subr.mxu0 %v569_v52  ;;  %v536_v6 = vld [vmem:[#allocation5 + $0x80] sm:$0xff]  ;;  %v529_v9 = vld [vmem:[#allocation5 + $0x48] sm:$0xff]  ;;  %v169_v52 = vld [vmem:[%s1977_s5 + $0x58] sm:$0xff] }
  0x4a   :  { %805 = vmatpush1.msra.mxu0 %v568_v53  ;;  %v532_v8 = vld [vmem:[#allocation5 + $0x60] sm:$0xff]  ;;  %v525_v11 = vld [vmem:[#allocation5 + $0x28] sm:$0xff] }
  0x4b   :  { %806 = vmatprep.subr.mxu0 %v565_v54  ;;  %v528_v10 = vld [vmem:[#allocation5 + $0x40] sm:$0xff]  ;;  %v521_v13 = vld [vmem:[#allocation5 + $0x8] sm:$0xff]  ;;  %v165_v54 = vld [vmem:[%s1977_s5 + $0x38] sm:$0xff] }
  0x4c   :  { %807 = vmatpush1.msra.mxu0 %v564_v55  ;;  %v524_v12 = vld [vmem:[#allocation5 + $0x20] sm:$0xff]  ;;  %v645_v15 = vld [vmem:[#allocation5 + $0x3e8] sm:$0xff] }
  0x4d   :  { %808 = vmatprep.subr.mxu0 %v561_v56  ;;  %v520_v14 = vld [vmem:[#allocation5] sm:$0xff]  ;;  %v641_v17 = vld [vmem:[#allocation5 + $0x3c8] sm:$0xff]  ;;  %v161_v56 = vld [vmem:[%s1977_s5 + $0x18] sm:$0xff] }
  0x4e   :  { %809 = vmatpush1.msra.mxu0 %v560_v57  ;;  %v644_v16 = vld [vmem:[#allocation5 + $0x3e0] sm:$0xff]  ;;  %v637_v19 = vld [vmem:[#allocation5 + $0x3a8] sm:$0xff] }
  0x4f   :  { %810 = vmatprep.subr.mxu0 %v557_v58  ;;  %v640_v18 = vld [vmem:[#allocation5 + $0x3c0] sm:$0xff]  ;;  %v633_v21 = vld [vmem:[#allocation5 + $0x388] sm:$0xff]  ;;  %v157_v58 = vld [vmem:[#allocation3 + $0x178] sm:$0xff] }
  0x50   :  { %811 = vmatpush1.msra.mxu0 %v556_v59  ;;  %v636_v20 = vld [vmem:[#allocation5 + $0x3a0] sm:$0xff]  ;;  %v629_v23 = vld [vmem:[#allocation5 + $0x368] sm:$0xff]  ;;  %v156_v59 = vld [vmem:[#allocation3 + $0x170] sm:$0xff] }
  0x51   :  { %812 = vmatprep.subr.mxu0 %v553_v60  ;;  %v632_v22 = vld [vmem:[#allocation5 + $0x380] sm:$0xff]  ;;  %v625_v25 = vld [vmem:[#allocation5 + $0x348] sm:$0xff]  ;;  %v153_v60 = vld [vmem:[#allocation3 + $0x158] sm:$0xff] }
  0x52   :  { %813 = vmatpush1.msra.mxu0 %v552_v61  ;;  %v628_v24 = vld [vmem:[#allocation5 + $0x360] sm:$0xff]  ;;  %v621_v27 = vld [vmem:[#allocation5 + $0x328] sm:$0xff]  ;;  %v152_v61 = vld [vmem:[#allocation3 + $0x150] sm:$0xff] }
  0x53   :  { %814 = vmatprep.subr.mxu0 %v549_v62  ;;  %v624_v26 = vld [vmem:[#allocation5 + $0x340] sm:$0xff]  ;;  %v617_v29 = vld [vmem:[#allocation5 + $0x308] sm:$0xff]  ;;  %v149_v62 = vld [vmem:[#allocation3 + $0x138] sm:$0xff] }
  0x54   :  { %815 = vmatpush1.msra.mxu0 %v548_v63  ;;  %v620_v28 = vld [vmem:[#allocation5 + $0x320] sm:$0xff]  ;;  %v613_v31 = vld [vmem:[#allocation5 + $0x2e8] sm:$0xff]  ;;  %v148_v63 = vld [vmem:[#allocation3 + $0x130] sm:$0xff] }
  0x55   :  { %816 = vmatprep.subr.mxu0 %v545_v0  ;;  %v616_v30 = vld [vmem:[#allocation5 + $0x300] sm:$0xff]  ;;  %v609_v33 = vld [vmem:[#allocation5 + $0x2c8] sm:$0xff]  ;;  %v145_v0 = vld [vmem:[#allocation3 + $0x118] sm:$0xff] }
  0x56   :  { %817 = vmatpush1.msra.mxu0 %v544_v1  ;;  %v612_v32 = vld [vmem:[#allocation5 + $0x2e0] sm:$0xff]  ;;  %v605_v35 = vld [vmem:[#allocation5 + $0x2a8] sm:$0xff]  ;;  %v144_v1 = vld [vmem:[#allocation3 + $0x110] sm:$0xff] }
  0x57   :  { %818 = vmatprep.subr.mxu0 %v541_v2  ;;  %v608_v34 = vld [vmem:[#allocation5 + $0x2c0] sm:$0xff]  ;;  %v188_v42 = vld [vmem:[%s1977_s5 + $0xf0] sm:$0xff]  ;;  %v141_v2 = vld [vmem:[#allocation3 + $0xf8] sm:$0xff] }
  0x58   :  { %819 = vmatpush1.msra.mxu0 %v540_v3  ;;  %v604_v36 = vld [vmem:[#allocation5 + $0x2a0] sm:$0xff]  ;;  %v184_v44 = vld [vmem:[%s1977_s5 + $0xd0] sm:$0xff] }
  0x59   :  { %820 = vmatprep.subr.mxu0 %v537_v4  ;;  %v180_v47 = vld [vmem:[%s1977_s5 + $0xb0] sm:$0xff]  ;;  %v137_v4 = vld [vmem:[#allocation3 + $0xd8] sm:$0xff] }
  0x5a   :  { %821 = vmatpush1.msra.mxu0 %v536_v6  ;;  %v176_v49 = vld [vmem:[%s1977_s5 + $0x90] sm:$0xff] }
  0x5b   :  { %822 = vmatprep.subr.mxu0 %v533_v7  ;;  %v172_v51 = vld [vmem:[%s1977_s5 + $0x70] sm:$0xff]  ;;  %v133_v7 = vld [vmem:[#allocation3 + $0xb8] sm:$0xff] }
  0x5c   :  { %823 = vmatpush1.msra.mxu0 %v532_v8  ;;  %v168_v53 = vld [vmem:[%s1977_s5 + $0x50] sm:$0xff] }
  0x5d   :  { %824 = vmatprep.subr.mxu0 %v529_v9  ;;  %v164_v55 = vld [vmem:[%s1977_s5 + $0x30] sm:$0xff] }
  0x5e   :  { %825 = vmatpush1.msra.mxu0 %v528_v10  ;;  %v160_v57 = vld [vmem:[%s1977_s5 + $0x10] sm:$0xff]  ;;  %v125_v10 = vld [vmem:[#allocation3 + $0x78] sm:$0xff] }
  0x5f   :  { %826 = vmatprep.subr.mxu0 %v525_v11  ;;  %v140_v3 = vld [vmem:[#allocation3 + $0xf0] sm:$0xff] }
  0x60   :  { %827 = vmatpush1.msra.mxu0 %v524_v12  ;;  %v136_v6 = vld [vmem:[#allocation3 + $0xd0] sm:$0xff]  ;;  %v121_v12 = vld [vmem:[#allocation3 + $0x58] sm:$0xff] }
  0x61   :  { %828 = vmatprep.subr.mxu0 %v521_v13  ;;  %v132_v8 = vld [vmem:[#allocation3 + $0xb0] sm:$0xff] }
  0x62   :  { %829 = vmatpush1.msra.mxu0 %v520_v14  ;;  %v128_v9 = vld [vmem:[#allocation3 + $0x90] sm:$0xff]  ;;  %v117_v14 = vld [vmem:[#allocation3 + $0x38] sm:$0xff] }
  0x63   :  { %830 = vmatprep.subr.mxu0 %v645_v15  ;;  %v124_v11 = vld [vmem:[#allocation3 + $0x70] sm:$0xff] }
  0x64   :  { %831 = vmatpush2.msra.mxu0 %v644_v16  ;;  %v120_v13 = vld [vmem:[#allocation3 + $0x50] sm:$0xff]  ;;  %v113_v16 = vld [vmem:[#allocation3 + $0x18] sm:$0xff] }
  0x65   :  { %832 = vmatprep.subr.mxu0 %v641_v17  ;;  %v116_v15 = vld [vmem:[#allocation3 + $0x30] sm:$0xff] }
  0x66   :  { %833 = vmatpush2.msra.mxu0 %v640_v18  ;;  %v112_v17 = vld [vmem:[#allocation3 + $0x10] sm:$0xff]  ;;  %v709_v18 = vld [vmem:[#allocation5 + $0x5e8] sm:$0xff] }
  0x67   :  { %834 = vmatprep.subr.mxu0 %v637_v19  ;;  %v708_v19 = vld [vmem:[#allocation5 + $0x5e0] sm:$0xff] }
  0x68   :  { %835 = vmatpush2.msra.mxu0 %v636_v20  ;;  %v705_v20 = vld [vmem:[#allocation5 + $0x5c8] sm:$0xff] }
  0x69   :  { %836 = vmatprep.subr.mxu0 %v633_v21  ;;  %v704_v21 = vld [vmem:[#allocation5 + $0x5c0] sm:$0xff] }
  0x6a   :  { %837 = vmatpush2.msra.mxu0 %v632_v22  ;;  %v701_v22 = vld [vmem:[#allocation5 + $0x5a8] sm:$0xff] }
  0x6b   :  { %838 = vmatprep.subr.mxu0 %v629_v23  ;;  %v700_v23 = vld [vmem:[#allocation5 + $0x5a0] sm:$0xff] }
  0x6c   :  { %839 = vmatpush2.msra.mxu0 %v628_v24  ;;  %v697_v24 = vld [vmem:[#allocation5 + $0x588] sm:$0xff] }
  0x6d   :  { %840 = vmatprep.subr.mxu0 %v625_v25  ;;  %v696_v25 = vld [vmem:[#allocation5 + $0x580] sm:$0xff] }
  0x6e   :  { %841 = vmatpush2.msra.mxu0 %v624_v26  ;;  %v693_v26 = vld [vmem:[#allocation5 + $0x568] sm:$0xff] }
  0x6f   :  { %842 = vmatprep.subr.mxu0 %v621_v27  ;;  %v692_v27 = vld [vmem:[#allocation5 + $0x560] sm:$0xff] }
  0x70   :  { %843 = vmatpush2.msra.mxu0 %v620_v28  ;;  %v689_v28 = vld [vmem:[#allocation5 + $0x548] sm:$0xff] }
  0x71   :  { %844 = vmatprep.subr.mxu0 %v617_v29  ;;  %v688_v29 = vld [vmem:[#allocation5 + $0x540] sm:$0xff] }
  0x72   :  { %845 = vmatpush2.msra.mxu0 %v616_v30  ;;  %v684_v30 = vld [vmem:[#allocation5 + $0x520] sm:$0xff] }
  0x73   :  { %846 = vmatprep.subr.mxu0 %v613_v31  ;;  %v681_v31 = vld [vmem:[#allocation5 + $0x508] sm:$0xff] }
  0x74   :  { %847 = vmatpush2.msra.mxu0 %v612_v32  ;;  %v601_v32 = vld [vmem:[#allocation5 + $0x288] sm:$0xff] }
  0x75   :  { %848 = vmatprep.subr.mxu0 %v609_v33  ;;  %v680_v33 = vld [vmem:[#allocation5 + $0x500] sm:$0xff] }
  0x76   :  { %849 = vmatpush2.msra.mxu0 %v608_v34  ;;  %v600_v34 = vld [vmem:[#allocation5 + $0x280] sm:$0xff] }
  0x77   :  { %850 = vmatprep.subr.mxu0 %v605_v35  ;;  %v677_v35 = vld [vmem:[#allocation5 + $0x4e8] sm:$0xff] }
  0x78   :  { %851 = vmatpush2.msra.mxu0 %v604_v36  ;;  %v597_v36 = vld [vmem:[#allocation5 + $0x268] sm:$0xff] }
  0x79   :  { %852 = vmatprep.subr.mxu0 %v601_v32 }
  0x7a   :  { %853 = vmatpush2.msra.mxu0 %v600_v34 }
  0x7b   :  { %854 = vmatprep.subr.mxu0 %v597_v36 }
  0xa5   :  { %v93_v39 = vpop.permute.xlu0 %92 }
  0xa6   :  { %v101_v40 = vmul.f32 %v1499_v37, %v93_v39  ;;  %v676_v37 = vld [vmem:[#allocation5 + $0x4e0] sm:$0xff]  ;;  %v673_v39 = vld [vmem:[#allocation5 + $0x4c8] sm:$0xff] }
  0xa8   :  { %v109_v41 = vadd.f32 %v1500_v38, %v101_v40  ;;  %v596_v38 = vld [vmem:[#allocation5 + $0x260] sm:$0xff]  ;;  %v593_v40 = vld [vmem:[#allocation5 + $0x248] sm:$0xff] }
  0xa9   :  { %855 = vmatpush2.msra.mxu0 %v596_v38 }
  0xaa   :  { %1501 = vmatmul.mubr.msk.f32.vlgmr.msra.gmra.mxu1 %vm190_vm1, %v109_v41  ;;  %856 = vmatprep.subr.mxu0 %v593_v40 }
  0xab   :  { %282 = vmatpush1.msra.mxu1 %v188_v42  ;;  %329 = vmatprep.mubr.f32.mxu1 %v1623_v5  ;;  %v592_v42 = vld [vmem:[#allocation5 + $0x240] sm:$0xff] }
  0xac   :  { %283 = vmatprep.subr.mxu1 %v185_v43  ;;  %v669_v43 = vld [vmem:[#allocation5 + $0x4a8] sm:$0xff]  ;;  %857 = vmatpush2.msra.mxu0 %v592_v42 }
  0xad   :  { %284 = vmatpush1.msra.mxu1 %v184_v44  ;;  %v589_v44 = vld [vmem:[#allocation5 + $0x228] sm:$0xff] }
  0xae   :  { %285 = vmatprep.subr.mxu1 %v181_v46  ;;  %v668_v46 = vld [vmem:[#allocation5 + $0x4a0] sm:$0xff]  ;;  %858 = vmatprep.subr.mxu0 %v589_v44 }
  0xaf   :  { %286 = vmatpush1.msra.mxu1 %v180_v47  ;;  %v588_v47 = vld [vmem:[#allocation5 + $0x220] sm:$0xff] }
  0xb0   :  { %287 = vmatprep.subr.mxu1 %v177_v48  ;;  %v665_v48 = vld [vmem:[#allocation5 + $0x488] sm:$0xff]  ;;  %859 = vmatpush2.msra.mxu0 %v588_v47 }
  0xb1   :  { %288 = vmatpush1.msra.mxu1 %v176_v49  ;;  %v585_v49 = vld [vmem:[#allocation5 + $0x208] sm:$0xff] }
  0xb2   :  { %289 = vmatprep.subr.mxu1 %v173_v50  ;;  %v664_v50 = vld [vmem:[#allocation5 + $0x480] sm:$0xff]  ;;  %860 = vmatprep.subr.mxu0 %v585_v49 }
  0xb3   :  { %290 = vmatpush1.msra.mxu1 %v172_v51  ;;  %v584_v51 = vld [vmem:[#allocation5 + $0x200] sm:$0xff] }
  0xb4   :  { %291 = vmatprep.subr.mxu1 %v169_v52  ;;  %v661_v52 = vld [vmem:[#allocation5 + $0x468] sm:$0xff]  ;;  %861 = vmatpush2.msra.mxu0 %v584_v51  ;;  %v578_v51 = vld [vmem:[#allocation5 + $0x1d0] sm:$0xff] }
  0xb5   :  { %292 = vmatpush1.msra.mxu1 %v168_v53  ;;  %v660_v53 = vld [vmem:[#allocation5 + $0x460] sm:$0xff] }
  0xb6   :  { %293 = vmatprep.subr.mxu1 %v165_v54  ;;  %v583_v54 = vld [vmem:[#allocation5 + $0x1f8] sm:$0xff] }
  0xb7   :  { %294 = vmatpush1.msra.mxu1 %v164_v55  ;;  %940 = vmatprep.subr.mxu0 %v583_v54  ;;  %v657_v55 = vld [vmem:[#allocation5 + $0x448] sm:$0xff]  ;;  %v571_v54 = vld [vmem:[#allocation5 + $0x198] sm:$0xff] }
  0xb8   :  { %295 = vmatprep.subr.mxu1 %v161_v56  ;;  %v656_v56 = vld [vmem:[#allocation5 + $0x440] sm:$0xff] }
  0xb9   :  { %296 = vmatpush1.msra.mxu1 %v160_v57  ;;  %v653_v57 = vld [vmem:[#allocation5 + $0x428] sm:$0xff] }
  0xba   :  { %1502 = vmatmul.mubr.msk.f32.vlgmr.msra.gmra.mxu1 %vm190_vm1, %v109_v41  ;;  %419 = vmatprep.subr.mxu1 %v157_v58  ;;  %v672_v41 = vld [vmem:[#allocation5 + $0x4c0] sm:$0xff] }
  0xbb   :  { %420 = vmatpush1.msra.mxu1 %v156_v59  ;;  %475 = vmatprep.mubr.f32.mxu1 %v1623_v5  ;;  %v129_v5 = vld [vmem:[#allocation3 + $0x98] sm:$0xff]  ;;  %v652_v58 = vld [vmem:[#allocation5 + $0x420] sm:$0xff]  ;;  %v649_v59 = vld [vmem:[#allocation5 + $0x408] sm:$0xff] }
  0xbc   :  { %421 = vmatprep.subr.mxu1 %v153_v60  ;;  %v648_v60 = vld [vmem:[#allocation5 + $0x400] sm:$0xff] }
  0xbd   :  { %422 = vmatpush1.msra.mxu1 %v152_v61  ;;  %v773_v61 = vld [vmem:[#allocation5 + $0x7e8] sm:$0xff] }
  0xbe   :  { %423 = vmatprep.subr.mxu1 %v149_v62  ;;  %v772_v62 = vld [vmem:[#allocation5 + $0x7e0] sm:$0xff] }
  0xbf   :  { %424 = vmatpush1.msra.mxu1 %v148_v63  ;;  %v769_v63 = vld [vmem:[#allocation5 + $0x7c8] sm:$0xff] }
  0xc0   :  { %425 = vmatprep.subr.mxu1 %v145_v0  ;;  %v768_v0 = vld [vmem:[#allocation5 + $0x7c0] sm:$0xff] }
  0xc1   :  { %426 = vmatpush1.msra.mxu1 %v144_v1  ;;  %v765_v1 = vld [vmem:[#allocation5 + $0x7a8] sm:$0xff] }
  0xc2   :  { %427 = vmatprep.subr.mxu1 %v141_v2  ;;  %v764_v2 = vld [vmem:[#allocation5 + $0x7a0] sm:$0xff] }
  0xc3   :  { %428 = vmatpush1.msra.mxu1 %v140_v3  ;;  %v761_v3 = vld [vmem:[#allocation5 + $0x788] sm:$0xff] }
  0xc4   :  { %429 = vmatprep.subr.mxu1 %v137_v4  ;;  %v760_v4 = vld [vmem:[#allocation5 + $0x780] sm:$0xff] }
  0xc5   :  { %430 = vmatpush1.msra.mxu1 %v136_v6  ;;  %v757_v6 = vld [vmem:[#allocation5 + $0x768] sm:$0xff] }
  0xc6   :  { %431 = vmatprep.subr.mxu1 %v133_v7  ;;  %v756_v7 = vld [vmem:[#allocation5 + $0x760] sm:$0xff] }
  0xc7   :  { %432 = vmatpush1.msra.mxu1 %v132_v8  ;;  %v753_v8 = vld [vmem:[#allocation5 + $0x748] sm:$0xff] }
  0xc8   :  { %433 = vmatprep.subr.mxu1 %v129_v5  ;;  %v752_v5 = vld [vmem:[#allocation5 + $0x740] sm:$0xff] }
  0xc9   :  { %434 = vmatpush1.msra.mxu1 %v128_v9  ;;  %v749_v9 = vld [vmem:[#allocation5 + $0x728] sm:$0xff] }
  0xca   :  { %435 = vmatprep.subr.mxu1 %v125_v10  ;;  %v748_v10 = vld [vmem:[#allocation5 + $0x720] sm:$0xff] }
  0xcb   :  { %436 = vmatpush1.msra.mxu1 %v124_v11  ;;  %v745_v11 = vld [vmem:[#allocation5 + $0x708] sm:$0xff] }
  0xcc   :  { %437 = vmatprep.subr.mxu1 %v121_v12  ;;  %v744_v12 = vld [vmem:[#allocation5 + $0x700] sm:$0xff] }
  0xcd   :  { %438 = vmatpush1.msra.mxu1 %v120_v13  ;;  %v741_v13 = vld [vmem:[#allocation5 + $0x6e8] sm:$0xff] }
  0xce   :  { %439 = vmatprep.subr.mxu1 %v117_v14  ;;  %v740_v14 = vld [vmem:[#allocation5 + $0x6e0] sm:$0xff] }
  0xcf   :  { %440 = vmatpush1.msra.mxu1 %v116_v15  ;;  %v737_v15 = vld [vmem:[#allocation5 + $0x6c8] sm:$0xff] }
  0xd0   :  { %441 = vmatprep.subr.mxu1 %v113_v16  ;;  %v736_v16 = vld [vmem:[#allocation5 + $0x6c0] sm:$0xff] }
  0xd1   :  { %442 = vmatpush1.msra.mxu1 %v112_v17  ;;  %v733_v17 = vld [vmem:[#allocation5 + $0x6a8] sm:$0xff] }
  0xd2   :  { %1504 = vmatmul.mubr.msk.f32.vlgmr.msra.gmra.mxu1 %vm336_vm0, %v1765_v45  ;;  %869 = vmatprep.subr.mxu1 %v709_v18  ;;  %v685_v45 = vld [vmem:[#allocation5 + $0x528] sm:$0xff]  ;;  %v732_v18 = vld [vmem:[#allocation5 + $0x6a0] sm:$0xff] }
  0xd3   :  { %870 = vmatpush1.msra.mxu1 %v708_v19  ;;  %v729_v19 = vld [vmem:[#allocation5 + $0x688] sm:$0xff] }
  0xd4   :  { %871 = vmatprep.subr.mxu1 %v705_v20  ;;  %v728_v20 = vld [vmem:[#allocation5 + $0x680] sm:$0xff] }
  0xd5   :  { %872 = vmatpush1.msra.mxu1 %v704_v21  ;;  %v725_v21 = vld [vmem:[#allocation5 + $0x668] sm:$0xff] }
  0xd6   :  { %873 = vmatprep.subr.mxu1 %v701_v22  ;;  %v724_v22 = vld [vmem:[#allocation5 + $0x660] sm:$0xff] }
  0xd7   :  { %874 = vmatpush1.msra.mxu1 %v700_v23  ;;  %v721_v23 = vld [vmem:[#allocation5 + $0x648] sm:$0xff] }
  0xd8   :  { %875 = vmatprep.subr.mxu1 %v697_v24  ;;  %v720_v24 = vld [vmem:[#allocation5 + $0x640] sm:$0xff] }
  0xd9   :  { %876 = vmatpush1.msra.mxu1 %v696_v25  ;;  %v717_v25 = vld [vmem:[#allocation5 + $0x628] sm:$0xff] }
  0xda   :  { %877 = vmatprep.subr.mxu1 %v693_v26  ;;  %v716_v26 = vld [vmem:[#allocation5 + $0x620] sm:$0xff] }
  0xdb   :  { %878 = vmatpush1.msra.mxu1 %v692_v27  ;;  %v713_v27 = vld [vmem:[#allocation5 + $0x608] sm:$0xff] }
  0xdc   :  { %879 = vmatprep.subr.mxu1 %v689_v28  ;;  %v712_v28 = vld [vmem:[#allocation5 + $0x600] sm:$0xff] }
  0xdd   :  { %880 = vmatpush1.msra.mxu1 %v688_v29  ;;  %v711_v29 = vld [vmem:[#allocation5 + $0x5f8] sm:$0xff] }
  0xde   :  { %881 = vmatprep.subr.mxu1 %v685_v45  ;;  %v484_v45 = vlaneseq }
  0xdf   :  { %882 = vmatpush1.msra.mxu1 %v684_v30 }
  0xe0   :  { %883 = vmatprep.subr.mxu1 %v681_v31  ;;  %v1826_v30 = vshrl.u32 %v484_v45, 7  ;;  %v642_v45 = vld [vmem:[#allocation5 + $0x3d0] sm:$0xff] }
  0xe1   :  { %884 = vmatpush1.msra.mxu1 %v680_v33  ;;  %v1834_v33 = vld [vmem:[%s1978_s6] sm:$0xf] }
  0xe2   :  { %885 = vmatprep.subr.mxu1 %v677_v35  ;;  %v1829_v31 = vsub.s32 0, %v1826_v30  ;;  %v1837_v34 = vsub.s32 1, %v1826_v30 }
  0xe3   :  { %886 = vmatpush1.msra.mxu1 %v676_v37 }
  0xe4   :  { %887 = vmatprep.subr.mxu1 %v673_v39  ;;  %v487_v35 = vrot.slane %v1834_v33, %v1829_v31  ;;  %v491_v39 = vrot.slane %v1834_v33, %v1837_v34 }
  0xe5   :  { %888 = vmatpush1.msra.mxu1 %v672_v41 }
  0xe6   :  { %889 = vmatprep.subr.mxu1 %v669_v43 }
  0xe7   :  { %890 = vmatpush1.msra.mxu1 %v668_v46 }
  0xe8   :  { %891 = vmatprep.subr.mxu1 %v665_v48  ;;  %v582_v48 = vld [vmem:[#allocation5 + $0x1f0] sm:$0xff] }
  0xe9   :  { %892 = vmatpush1.msra.mxu1 %v664_v50  ;;  %v579_v50 = vld [vmem:[#allocation5 + $0x1d8] sm:$0xff] }
  0xea   :  { %893 = vmatprep.subr.mxu1 %v661_v52  ;;  %v575_v52 = vld [vmem:[#allocation5 + $0x1b8] sm:$0xff] }
  0xeb   :  { %894 = vmatpush1.msra.mxu1 %v660_v53  ;;  %v574_v53 = vld [vmem:[#allocation5 + $0x1b0] sm:$0xff] }
  0xec   :  { %895 = vmatprep.subr.mxu1 %v657_v55  ;;  %v570_v55 = vld [vmem:[#allocation5 + $0x190] sm:$0xff] }
  0xed   :  { %896 = vmatpush1.msra.mxu1 %v656_v56  ;;  %v567_v56 = vld [vmem:[#allocation5 + $0x178] sm:$0xff] }
  0xee   :  { %897 = vmatprep.subr.mxu1 %v653_v57  ;;  %v566_v57 = vld [vmem:[#allocation5 + $0x170] sm:$0xff] }
  0xef   :  { %898 = vmatpush1.msra.mxu1 %v652_v58  ;;  %v563_v58 = vld [vmem:[#allocation5 + $0x158] sm:$0xff] }
  0xf0   :  { %899 = vmatprep.subr.mxu1 %v649_v59  ;;  %v562_v59 = vld [vmem:[#allocation5 + $0x150] sm:$0xff] }
  0xf1   :  { %900 = vmatpush1.msra.mxu1 %v648_v60  ;;  %v559_v60 = vld [vmem:[#allocation5 + $0x138] sm:$0xff] }
  0xf2   :  { %901 = vmatprep.subr.mxu1 %v773_v61  ;;  %v558_v61 = vld [vmem:[#allocation5 + $0x130] sm:$0xff] }
  0xf3   :  { %902 = vmatpush2.msra.mxu1 %v772_v62  ;;  %v555_v62 = vld [vmem:[#allocation5 + $0x118] sm:$0xff] }
  0xf4   :  { %903 = vmatprep.subr.mxu1 %v769_v63  ;;  %v554_v63 = vld [vmem:[#allocation5 + $0x110] sm:$0xff] }
  0xf5   :  { %904 = vmatpush2.msra.mxu1 %v768_v0  ;;  %v551_v0 = vld [vmem:[#allocation5 + $0xf8] sm:$0xff] }
  0xf6   :  { %905 = vmatprep.subr.mxu1 %v765_v1  ;;  %v550_v1 = vld [vmem:[#allocation5 + $0xf0] sm:$0xff] }
  0xf7   :  { %906 = vmatpush2.msra.mxu1 %v764_v2  ;;  %v547_v2 = vld [vmem:[#allocation5 + $0xd8] sm:$0xff] }
  0xf8   :  { %907 = vmatprep.subr.mxu1 %v761_v3  ;;  %v546_v3 = vld [vmem:[#allocation5 + $0xd0] sm:$0xff] }
  0xf9   :  { %908 = vmatpush2.msra.mxu1 %v760_v4  ;;  %v543_v4 = vld [vmem:[#allocation5 + $0xb8] sm:$0xff] }
  0xfa   :  { %909 = vmatprep.subr.mxu1 %v757_v6  ;;  %v542_v6 = vld [vmem:[#allocation5 + $0xb0] sm:$0xff] }
  0xfb   :  { %910 = vmatpush2.msra.mxu1 %v756_v7  ;;  %v539_v7 = vld [vmem:[#allocation5 + $0x98] sm:$0xff] }
  0xfc   :  { %911 = vmatprep.subr.mxu1 %v753_v8  ;;  %v538_v8 = vld [vmem:[#allocation5 + $0x90] sm:$0xff] }
  0xfd   :  { %912 = vmatpush2.msra.mxu1 %v752_v5  ;;  %v535_v5 = vld [vmem:[#allocation5 + $0x78] sm:$0xff] }
  0xfe   :  { %913 = vmatprep.subr.mxu1 %v749_v9  ;;  %v534_v9 = vld [vmem:[#allocation5 + $0x70] sm:$0xff] }
  0xff   :  { %914 = vmatpush2.msra.mxu1 %v748_v10 }
 0x100   :  { %915 = vmatprep.subr.mxu1 %v745_v11  ;;  %v531_v11 = vld [vmem:[#allocation5 + $0x58] sm:$0xff] }
 0x101   :  { %916 = vmatpush2.msra.mxu1 %v744_v12  ;;  %v530_v12 = vld [vmem:[#allocation5 + $0x50] sm:$0xff] }
 0x102   :  { %917 = vmatprep.subr.mxu1 %v741_v13  ;;  %v494_v13 = vsub.s32 2, %v1826_v30 }
 0x103   :  { %918 = vmatpush2.msra.mxu1 %v740_v14  ;;  %v406_v32 = vpop.f32.mrf.mxu0  ;;  %v527_v14 = vld [vmem:[#allocation5 + $0x38] sm:$0xff] }
 0x104   :  { %919 = vmatprep.subr.mxu1 %v737_v15  ;;  %v526_v15 = vld [vmem:[#allocation5 + $0x30] sm:$0xff] }
 0x105   :  { %920 = vmatpush2.msra.mxu1 %v736_v16  ;;  %v408_v37 = vpop.f32.mrf.mxu0  ;;  %v498_v16 = vsub.s32 3, %v1826_v30  ;;  %v1413_v30 = vld [vmem:[%s1983_s11 + $0xf8] sm:$0xff] }
 0x106   :  { %921 = vmatprep.subr.mxu1 %v733_v17 }
 0x107   :  { %922 = vmatpush2.msra.mxu1 %v732_v18  ;;  %v523_v18 = vld [vmem:[#allocation5 + $0x18] sm:$0xff] }
 0x108   :  { %923 = vmatprep.subr.mxu1 %v729_v19  ;;  %v495_v19 = vrot.slane %v1834_v33, %v494_v13 }
 0x109   :  { %924 = vmatpush2.msra.mxu1 %v728_v20  ;;  %v522_v20 = vld [vmem:[#allocation5 + $0x10] sm:$0xff] }
 0x10a   :  { %925 = vmatprep.subr.mxu1 %v725_v21 }
 0x10b   :  { %926 = vmatpush2.msra.mxu1 %v724_v22  ;;  %v647_v22 = vld [vmem:[#allocation5 + $0x3f8] sm:$0xff] }
 0x10c   :  { %927 = vmatprep.subr.mxu1 %v721_v23 }
 0x10d   :  { %928 = vmatpush2.msra.mxu1 %v720_v24  ;;  %v499_v24 = vrot.slane %v1834_v33, %v498_v16  ;;  %v634_v33 = vld [vmem:[#allocation5 + $0x390] sm:$0xff] }
 0x10e   :  { %929 = vmatprep.subr.mxu1 %v717_v25  ;;  %v646_v25 = vld [vmem:[#allocation5 + $0x3f0] sm:$0xff] }
 0x10f   :  { %930 = vmatpush2.msra.mxu1 %v716_v26 }
 0x110   :  { %931 = vmatprep.subr.mxu1 %v713_v27  ;;  %v643_v27 = vld [vmem:[#allocation5 + $0x3d8] sm:$0xff] }
 0x111   :  { %932 = vmatpush2.msra.mxu1 %v712_v28 }
 0x112   :  { %1011 = vmatprep.subr.mxu1 %v711_v29 }
 0x16a   :  { %v260_v36 = vpop.f32.mrf.mxu1 }
 0x16b   :  { %v407_v38 = vadd.f32 %v406_v32, %v260_v36  ;;  %v639_v32 = vld [vmem:[#allocation5 + $0x3b8] sm:$0xff]  ;;  %v638_v36 = vld [vmem:[#allocation5 + $0x3b0] sm:$0xff] }
 0x16c   :  { %v262_v40 = vpop.f32.mrf.mxu1 }
 0x16d   :  { %v504_v41 = vadd.f32 %v487_v35, %v407_v38  ;;  %v409_v42 = vadd.f32 %v408_v37, %v262_v40  ;;  %v635_v38 = vld [vmem:[#allocation5 + $0x398] sm:$0xff] }
 0x16e   :  { %v631_v40 = vld [vmem:[#allocation5 + $0x378] sm:$0xff] }
 0x16f   :  { %v505_v43 = vadd.f32 %v491_v39, %v409_v42  ;;  %v512_v44 = vmul.f32 0.01, %v504_v41  ;;  %vm508_vm3 = vcmp.ge.f32.partialorder %v504_v41, 0.0  ;;  %v710_v42 = vld [vmem:[#allocation5 + $0x5f0] sm:$0xff] }
 0x171   :  { %vm509_vm2 = vcmp.ge.f32.partialorder %v505_v43, 0.0  ;;  %v513_v46 = vmul.f32 0.01, %v505_v43  ;;  %v1843_v49 = vsel %vm508_vm3, %v504_v41, %v512_v44 }
 0x173   :  { %v517_v47 = vsel %vm509_vm2, %v505_v43, %v513_v46  ;;  %v630_v43 = vld [vmem:[#allocation5 + $0x370] sm:$0xff]  ;;  %v707_v46 = vld [vmem:[#allocation5 + $0x5d8] sm:$0xff] }
 0x174   :  { %862 = vmatprep.mubr.f32.mxu0 %v517_v47 }
 0x175   :  { %863 = vmatmul.mubr.f32.vlgmr.msra.gmra.mxu0 %v1843_v49 }
 0x176   :  { %941 = vmatpush1.msra.mxu0 %v582_v48  ;;  %1004 = vmatprep.mubr.f32.mxu0 %v517_v47  ;;  %v627_v47 = vld [vmem:[#allocation5 + $0x358] sm:$0xff]  ;;  %v706_v48 = vld [vmem:[#allocation5 + $0x5d0] sm:$0xff] }
 0x177   :  { %942 = vmatprep.subr.mxu0 %v579_v50  ;;  %v626_v50 = vld [vmem:[#allocation5 + $0x350] sm:$0xff] }
 0x178   :  { %943 = vmatpush1.msra.mxu0 %v578_v51  ;;  %v703_v51 = vld [vmem:[#allocation5 + $0x5b8] sm:$0xff] }
 0x179   :  { %944 = vmatprep.subr.mxu0 %v575_v52  ;;  %v623_v52 = vld [vmem:[#allocation5 + $0x338] sm:$0xff] }
 0x17a   :  { %945 = vmatpush1.msra.mxu0 %v574_v53  ;;  %v331_v10 = vpop.f32.mrf.mxu1  ;;  %v702_v53 = vld [vmem:[#allocation5 + $0x5b0] sm:$0xff] }
 0x17b   :  { %946 = vmatprep.subr.mxu0 %v571_v54  ;;  %v622_v54 = vld [vmem:[#allocation5 + $0x330] sm:$0xff] }
 0x17c   :  { %947 = vmatpush1.msra.mxu0 %v570_v55  ;;  %v333_v17 = vpop.f32.mrf.mxu1  ;;  %v699_v55 = vld [vmem:[#allocation5 + $0x598] sm:$0xff] }
 0x17d   :  { %948 = vmatprep.subr.mxu0 %v567_v56  ;;  %v619_v56 = vld [vmem:[#allocation5 + $0x318] sm:$0xff] }
 0x17e   :  { %949 = vmatpush1.msra.mxu0 %v566_v57  ;;  %v698_v57 = vld [vmem:[#allocation5 + $0x590] sm:$0xff] }
 0x17f   :  { %950 = vmatprep.subr.mxu0 %v563_v58  ;;  %v618_v58 = vld [vmem:[#allocation5 + $0x310] sm:$0xff] }
 0x180   :  { %951 = vmatpush1.msra.mxu0 %v562_v59  ;;  %v695_v59 = vld [vmem:[#allocation5 + $0x578] sm:$0xff] }
 0x181   :  { %952 = vmatprep.subr.mxu0 %v559_v60  ;;  %v615_v60 = vld [vmem:[#allocation5 + $0x2f8] sm:$0xff] }
 0x182   :  { %953 = vmatpush1.msra.mxu0 %v558_v61  ;;  %v694_v61 = vld [vmem:[#allocation5 + $0x570] sm:$0xff] }
 0x183   :  { %954 = vmatprep.subr.mxu0 %v555_v62  ;;  %v614_v62 = vld [vmem:[#allocation5 + $0x2f0] sm:$0xff] }
 0x184   :  { %955 = vmatpush1.msra.mxu0 %v554_v63  ;;  %v691_v63 = vld [vmem:[#allocation5 + $0x558] sm:$0xff] }
 0x185   :  { %956 = vmatprep.subr.mxu0 %v551_v0  ;;  %v611_v0 = vld [vmem:[#allocation5 + $0x2d8] sm:$0xff] }
 0x186   :  { %957 = vmatpush1.msra.mxu0 %v550_v1  ;;  %v690_v1 = vld [vmem:[#allocation5 + $0x550] sm:$0xff] }
 0x187   :  { %958 = vmatprep.subr.mxu0 %v547_v2  ;;  %v610_v2 = vld [vmem:[#allocation5 + $0x2d0] sm:$0xff] }
 0x188   :  { %959 = vmatpush1.msra.mxu0 %v546_v3  ;;  %v687_v3 = vld [vmem:[#allocation5 + $0x538] sm:$0xff] }
 0x189   :  { %960 = vmatprep.subr.mxu0 %v543_v4  ;;  %v607_v4 = vld [vmem:[#allocation5 + $0x2b8] sm:$0xff] }
 0x18a   :  { %961 = vmatpush1.msra.mxu0 %v542_v6  ;;  %v686_v6 = vld [vmem:[#allocation5 + $0x530] sm:$0xff] }
 0x18b   :  { %962 = vmatprep.subr.mxu0 %v539_v7  ;;  %v606_v7 = vld [vmem:[#allocation5 + $0x2b0] sm:$0xff] }
 0x18c   :  { %963 = vmatpush1.msra.mxu0 %v538_v8  ;;  %v683_v8 = vld [vmem:[#allocation5 + $0x518] sm:$0xff] }
 0x18d   :  { %964 = vmatprep.subr.mxu0 %v535_v5  ;;  %v603_v5 = vld [vmem:[#allocation5 + $0x298] sm:$0xff] }
 0x18e   :  { %965 = vmatpush1.msra.mxu0 %v534_v9  ;;  %v682_v9 = vld [vmem:[#allocation5 + $0x510] sm:$0xff] }
 0x18f   :  { %966 = vmatprep.subr.mxu0 %v531_v11  ;;  %v679_v11 = vld [vmem:[#allocation5 + $0x4f8] sm:$0xff] }
 0x190   :  { %967 = vmatpush1.msra.mxu0 %v530_v12  ;;  %v599_v12 = vld [vmem:[#allocation5 + $0x278] sm:$0xff] }
 0x191   :  { %968 = vmatprep.subr.mxu0 %v527_v14  ;;  %v678_v14 = vld [vmem:[#allocation5 + $0x4f0] sm:$0xff] }
 0x192   :  { %v477_v21 = vpop.f32.mrf.mxu1  ;;  %969 = vmatpush1.msra.mxu0 %v526_v15  ;;  %v598_v15 = vld [vmem:[#allocation5 + $0x270] sm:$0xff] }
 0x193   :  { %v478_v23 = vadd.f32 %v477_v21, %v331_v10  ;;  %970 = vmatprep.subr.mxu0 %v523_v18  ;;  %v602_v10 = vld [vmem:[#allocation5 + $0x290] sm:$0xff]  ;;  %v595_v18 = vld [vmem:[#allocation5 + $0x258] sm:$0xff] }
 0x194   :  { %v479_v26 = vpop.f32.mrf.mxu1  ;;  %971 = vmatpush1.msra.mxu0 %v522_v20  ;;  %v594_v20 = vld [vmem:[#allocation5 + $0x250] sm:$0xff]  ;;  %v671_v21 = vld [vmem:[#allocation5 + $0x4b8] sm:$0xff] }
 0x195   :  { %v506_v28 = vadd.f32 %v495_v19, %v478_v23  ;;  %v480_v29 = vadd.f32 %v479_v26, %v333_v17  ;;  %972 = vmatprep.subr.mxu0 %v647_v22  ;;  %v675_v17 = vld [vmem:[#allocation5 + $0x4d8] sm:$0xff]  ;;  %v674_v19 = vld [vmem:[#allocation5 + $0x4d0] sm:$0xff] }
 0x196   :  { %973 = vmatpush2.msra.mxu0 %v646_v25  ;;  %v591_v22 = vld [vmem:[#allocation5 + $0x238] sm:$0xff]  ;;  %v670_v23 = vld [vmem:[#allocation5 + $0x4b0] sm:$0xff] }
 0x197   :  { %v507_v35 = vadd.f32 %v499_v24, %v480_v29  ;;  %974 = vmatprep.subr.mxu0 %v643_v27  ;;  %v514_v37 = vmul.f32 0.01, %v506_v28  ;;  %vm510_vm5 = vcmp.ge.f32.partialorder %v506_v28, 0.0  ;;  %v590_v24 = vld [vmem:[#allocation5 + $0x230] sm:$0xff]  ;;  %v667_v25 = vld [vmem:[#allocation5 + $0x498] sm:$0xff] }
 0x198   :  { %975 = vmatpush2.msra.mxu0 %v642_v45  ;;  %v587_v26 = vld [vmem:[#allocation5 + $0x218] sm:$0xff]  ;;  %v666_v27 = vld [vmem:[#allocation5 + $0x490] sm:$0xff] }
 0x199   :  { %976 = vmatprep.subr.mxu0 %v639_v32  ;;  %vm511_vm4 = vcmp.ge.f32.partialorder %v507_v35, 0.0  ;;  %v515_v39 = vmul.f32 0.01, %v507_v35  ;;  %v1854_v44 = vsel %vm510_vm5, %v506_v28, %v514_v37  ;;  %v586_v28 = vld [vmem:[#allocation5 + $0x210] sm:$0xff]  ;;  %v663_v29 = vld [vmem:[#allocation5 + $0x478] sm:$0xff] }
 0x19a   :  { %977 = vmatpush2.msra.mxu0 %v638_v36  ;;  %v662_v45 = vld [vmem:[#allocation5 + $0x470] sm:$0xff]  ;;  %v659_v32 = vld [vmem:[#allocation5 + $0x458] sm:$0xff] }
 0x19b   :  { %978 = vmatprep.subr.mxu0 %v635_v38  ;;  %v519_v41 = vsel %vm511_vm4, %v507_v35, %v515_v39  ;;  %v1125_v35 = vld [vmem:[#allocation7 + $0xf8] sm:$0xff]  ;;  %v658_v36 = vld [vmem:[#allocation5 + $0x450] sm:$0xff]  ;;  %v1123_v39 = vld [vmem:[#allocation7 + $0xe8] sm:$0xff] }
 0x19c   :  { %933 = vmatprep.mubr.f32.mxu1 %v519_v41  ;;  %979 = vmatpush2.msra.mxu0 %v634_v33  ;;  %v1124_v37 = vld [vmem:[#allocation7 + $0xf0] sm:$0xff]  ;;  %v655_v38 = vld [vmem:[#allocation5 + $0x438] sm:$0xff] }
 0x19d   :  { %934 = vmatmul.mubr.f32.vlgmr.msra.gmra.mxu1 %v1854_v44  ;;  %980 = vmatprep.subr.mxu0 %v631_v40  ;;  %v654_v33 = vld [vmem:[#allocation5 + $0x430] sm:$0xff]  ;;  %v1122_v40 = vld [vmem:[#allocation7 + $0xe0] sm:$0xff] }
 0x19e   :  { %1012 = vmatpush1.msra.mxu1 %v710_v42  ;;  %981 = vmatpush2.msra.mxu0 %v630_v43  ;;  %v1121_v42 = vld [vmem:[#allocation7 + $0xd8] sm:$0xff]  ;;  %v650_v43 = vld [vmem:[#allocation5 + $0x410] sm:$0xff] }
 0x19f   :  { %1013 = vmatprep.subr.mxu1 %v707_v46  ;;  %1075 = vmatprep.mubr.f32.mxu1 %v519_v41  ;;  %v651_v41 = vld [vmem:[#allocation5 + $0x418] sm:$0xff]  ;;  %v1120_v46 = vld [vmem:[#allocation7 + $0xd0] sm:$0xff] }
 0x1a0   :  { %982 = vmatprep.subr.mxu0 %v627_v47  ;;  %1014 = vmatpush1.msra.mxu1 %v706_v48  ;;  %v775_v47 = vld [vmem:[#allocation5 + $0x7f8] sm:$0xff]  ;;  %v1119_v48 = vld [vmem:[#allocation7 + $0xc8] sm:$0xff] }
 0x1a1   :  { %983 = vmatpush2.msra.mxu0 %v626_v50  ;;  %1015 = vmatprep.subr.mxu1 %v703_v51  ;;  %v1118_v50 = vld [vmem:[#allocation7 + $0xc0] sm:$0xff]  ;;  %v771_v51 = vld [vmem:[#allocation5 + $0x7d8] sm:$0xff] }
 0x1a2   :  { %984 = vmatprep.subr.mxu0 %v623_v52  ;;  %1016 = vmatpush1.msra.mxu1 %v702_v53  ;;  %v1117_v52 = vld [vmem:[#allocation7 + $0xb8] sm:$0xff]  ;;  %v770_v53 = vld [vmem:[#allocation5 + $0x7d0] sm:$0xff] }
 0x1a3   :  { %985 = vmatpush2.msra.mxu0 %v622_v54  ;;  %1017 = vmatprep.subr.mxu1 %v699_v55  ;;  %v1116_v54 = vld [vmem:[#allocation7 + $0xb0] sm:$0xff]  ;;  %v767_v55 = vld [vmem:[#allocation5 + $0x7b8] sm:$0xff] }
 0x1a4   :  { %986 = vmatprep.subr.mxu0 %v619_v56  ;;  %1018 = vmatpush1.msra.mxu1 %v698_v57  ;;  %v1115_v56 = vld [vmem:[#allocation7 + $0xa8] sm:$0xff]  ;;  %v766_v57 = vld [vmem:[#allocation5 + $0x7b0] sm:$0xff] }
 0x1a5   :  { %987 = vmatpush2.msra.mxu0 %v618_v58  ;;  %1019 = vmatprep.subr.mxu1 %v695_v59  ;;  %v1114_v58 = vld [vmem:[#allocation7 + $0xa0] sm:$0xff]  ;;  %v763_v59 = vld [vmem:[#allocation5 + $0x798] sm:$0xff] }
 0x1a6   :  { %988 = vmatprep.subr.mxu0 %v615_v60  ;;  %1020 = vmatpush1.msra.mxu1 %v694_v61  ;;  %v1113_v60 = vld [vmem:[#allocation7 + $0x98] sm:$0xff]  ;;  %v762_v61 = vld [vmem:[#allocation5 + $0x790] sm:$0xff] }
 0x1a7   :  { %989 = vmatpush2.msra.mxu0 %v614_v62  ;;  %1021 = vmatprep.subr.mxu1 %v691_v63  ;;  %v1112_v62 = vld [vmem:[#allocation7 + $0x90] sm:$0xff]  ;;  %v759_v63 = vld [vmem:[#allocation5 + $0x778] sm:$0xff] }
 0x1a8   :  { %990 = vmatprep.subr.mxu0 %v611_v0  ;;  %1022 = vmatpush1.msra.mxu1 %v690_v1  ;;  %v1111_v0 = vld [vmem:[#allocation7 + $0x88] sm:$0xff]  ;;  %v758_v1 = vld [vmem:[#allocation5 + $0x770] sm:$0xff] }
 0x1a9   :  { %991 = vmatpush2.msra.mxu0 %v610_v2  ;;  %1023 = vmatprep.subr.mxu1 %v687_v3  ;;  %v1110_v2 = vld [vmem:[#allocation7 + $0x80] sm:$0xff]  ;;  %v755_v3 = vld [vmem:[#allocation5 + $0x758] sm:$0xff] }
 0x1aa   :  { %992 = vmatprep.subr.mxu0 %v607_v4  ;;  %1024 = vmatpush1.msra.mxu1 %v686_v6  ;;  %v1109_v4 = vld [vmem:[#allocation7 + $0x78] sm:$0xff]  ;;  %v754_v6 = vld [vmem:[#allocation5 + $0x750] sm:$0xff] }
 0x1ab   :  { %993 = vmatpush2.msra.mxu0 %v606_v7  ;;  %1025 = vmatprep.subr.mxu1 %v683_v8  ;;  %v1108_v7 = vld [vmem:[#allocation7 + $0x70] sm:$0xff]  ;;  %v751_v8 = vld [vmem:[#allocation5 + $0x738] sm:$0xff] }
 0x1ac   :  { %994 = vmatprep.subr.mxu0 %v603_v5  ;;  %1026 = vmatpush1.msra.mxu1 %v682_v9  ;;  %v1107_v5 = vld [vmem:[#allocation7 + $0x68] sm:$0xff]  ;;  %v750_v9 = vld [vmem:[#allocation5 + $0x730] sm:$0xff] }
 0x1ad   :  { %995 = vmatpush2.msra.mxu0 %v602_v10  ;;  %1027 = vmatprep.subr.mxu1 %v679_v11  ;;  %v1106_v10 = vld [vmem:[#allocation7 + $0x60] sm:$0xff]  ;;  %v747_v11 = vld [vmem:[#allocation5 + $0x718] sm:$0xff] }
 0x1ae   :  { %996 = vmatprep.subr.mxu0 %v599_v12  ;;  %1028 = vmatpush1.msra.mxu1 %v678_v14  ;;  %v1105_v12 = vld [vmem:[#allocation7 + $0x58] sm:$0xff]  ;;  %v746_v14 = vld [vmem:[#allocation5 + $0x710] sm:$0xff] }
 0x1af   :  { %997 = vmatpush2.msra.mxu0 %v598_v15  ;;  %1029 = vmatprep.subr.mxu1 %v675_v17  ;;  %v1104_v15 = vld [vmem:[#allocation7 + $0x50] sm:$0xff]  ;;  %v743_v17 = vld [vmem:[#allocation5 + $0x6f8] sm:$0xff] }
 0x1b0   :  { %998 = vmatprep.subr.mxu0 %v595_v18  ;;  %1030 = vmatpush1.msra.mxu1 %v674_v19  ;;  %v1103_v18 = vld [vmem:[#allocation7 + $0x48] sm:$0xff]  ;;  %v742_v19 = vld [vmem:[#allocation5 + $0x6f0] sm:$0xff] }
 0x1b1   :  { %999 = vmatpush2.msra.mxu0 %v594_v20  ;;  %1031 = vmatprep.subr.mxu1 %v671_v21  ;;  %v1102_v20 = vld [vmem:[#allocation7 + $0x40] sm:$0xff]  ;;  %v739_v21 = vld [vmem:[#allocation5 + $0x6d8] sm:$0xff] }
 0x1b2   :  { %1000 = vmatprep.subr.mxu0 %v591_v22  ;;  %1032 = vmatpush1.msra.mxu1 %v670_v23  ;;  %v1101_v22 = vld [vmem:[#allocation7 + $0x38] sm:$0xff]  ;;  %v738_v23 = vld [vmem:[#allocation5 + $0x6d0] sm:$0xff] }
 0x1b3   :  { %1001 = vmatpush2.msra.mxu0 %v590_v24  ;;  %1033 = vmatprep.subr.mxu1 %v667_v25  ;;  %v1100_v24 = vld [vmem:[#allocation7 + $0x30] sm:$0xff]  ;;  %v735_v25 = vld [vmem:[#allocation5 + $0x6b8] sm:$0xff] }
 0x1b4   :  { %1002 = vmatprep.subr.mxu0 %v587_v26  ;;  %1034 = vmatpush1.msra.mxu1 %v666_v27  ;;  %v1099_v26 = vld [vmem:[#allocation7 + $0x28] sm:$0xff]  ;;  %v734_v27 = vld [vmem:[#allocation5 + $0x6b0] sm:$0xff] }
 0x1b5   :  { %1003 = vmatpush2.msra.mxu0 %v586_v28  ;;  %1035 = vmatprep.subr.mxu1 %v663_v29  ;;  %v1098_v28 = vld [vmem:[#allocation7 + $0x20] sm:$0xff]  ;;  %v731_v29 = vld [vmem:[#allocation5 + $0x698] sm:$0xff] }
 0x1b6   :  { %1005 = vmatmul.mubr.f32.vlgmr.msra.gmra.mxu0 %v1843_v49  ;;  %1036 = vmatpush1.msra.mxu1 %v662_v45  ;;  %v774_v49 = vld [vmem:[#allocation5 + $0x7f0] sm:$0xff]  ;;  %v1097_v45 = vld [vmem:[#allocation7 + $0x18] sm:$0xff] }
 0x1b7   :  { %1037 = vmatprep.subr.mxu1 %v659_v32  ;;  %1234 = vmatprep.subr.mxu0 %v1125_v35  ;;  %v730_v32 = vld [vmem:[#allocation5 + $0x690] sm:$0xff] }
 0x1b8   :  { %1038 = vmatpush1.msra.mxu1 %v658_v36  ;;  %1235 = vmatpush1.msra.mxu0 %v1124_v37  ;;  %v1096_v35 = vld [vmem:[#allocation7 + $0x10] sm:$0xff]  ;;  %v727_v36 = vld [vmem:[#allocation5 + $0x678] sm:$0xff]  ;;  %v1095_v37 = vld [vmem:[#allocation7 + $0x8] sm:$0xff] }
 0x1b9   :  { %1039 = vmatprep.subr.mxu1 %v655_v38  ;;  %1236 = vmatprep.subr.mxu0 %v1123_v39  ;;  %v726_v38 = vld [vmem:[#allocation5 + $0x670] sm:$0xff]  ;;  %v1094_v39 = vld [vmem:[#allocation7] sm:$0xff] }
 0x1ba   :  { %1040 = vmatpush1.msra.mxu1 %v654_v33  ;;  %1237 = vmatpush1.msra.mxu0 %v1122_v40  ;;  %v723_v33 = vld [vmem:[#allocation5 + $0x658] sm:$0xff] }
 0x1bb   :  { %1041 = vmatprep.subr.mxu1 %v651_v41  ;;  %1238 = vmatprep.subr.mxu0 %v1121_v42  ;;  %v1157_v40 = vld [vmem:[#allocation7 + $0x1f8] sm:$0xff]  ;;  %v722_v41 = vld [vmem:[#allocation5 + $0x650] sm:$0xff] }
 0x1bc   :  { %1042 = vmatpush1.msra.mxu1 %v650_v43  ;;  %1239 = vmatpush1.msra.mxu0 %v1120_v46  ;;  %v1156_v42 = vld [vmem:[#allocation7 + $0x1f0] sm:$0xff]  ;;  %v719_v43 = vld [vmem:[#allocation5 + $0x638] sm:$0xff]  ;;  %v1155_v46 = vld [vmem:[#allocation7 + $0x1e8] sm:$0xff] }
 0x1bd   :  { %1043 = vmatprep.subr.mxu1 %v775_v47  ;;  %1240 = vmatprep.subr.mxu0 %v1119_v48  ;;  %v718_v47 = vld [vmem:[#allocation5 + $0x630] sm:$0xff]  ;;  %v1154_v48 = vld [vmem:[#allocation7 + $0x1e0] sm:$0xff] }
 0x1be   :  { %1044 = vmatpush2.msra.mxu1 %v774_v49  ;;  %1241 = vmatpush1.msra.mxu0 %v1118_v50  ;;  %v715_v49 = vld [vmem:[#allocation5 + $0x618] sm:$0xff] }
 0x1bf   :  { %1045 = vmatprep.subr.mxu1 %v771_v51  ;;  %1242 = vmatprep.subr.mxu0 %v1117_v52  ;;  %v1153_v50 = vld [vmem:[#allocation7 + $0x1d8] sm:$0xff]  ;;  %v714_v51 = vld [vmem:[#allocation5 + $0x610] sm:$0xff] }
 0x1c0   :  { %1046 = vmatpush2.msra.mxu1 %v770_v53  ;;  %1243 = vmatpush1.msra.mxu0 %v1116_v54  ;;  %v1152_v52 = vld [vmem:[#allocation7 + $0x1d0] sm:$0xff]  ;;  %v1151_v53 = vld [vmem:[#allocation7 + $0x1c8] sm:$0xff]  ;;  %v1150_v54 = vld [vmem:[#allocation7 + $0x1c0] sm:$0xff] }
 0x1c1   :  { %1047 = vmatprep.subr.mxu1 %v767_v55  ;;  %1244 = vmatprep.subr.mxu0 %v1115_v56  ;;  %v1149_v55 = vld [vmem:[#allocation7 + $0x1b8] sm:$0xff]  ;;  %v1148_v56 = vld [vmem:[#allocation7 + $0x1b0] sm:$0xff] }
 0x1c2   :  { %1048 = vmatpush2.msra.mxu1 %v766_v57  ;;  %1245 = vmatpush1.msra.mxu0 %v1114_v58  ;;  %v1147_v57 = vld [vmem:[#allocation7 + $0x1a8] sm:$0xff]  ;;  %v1146_v58 = vld [vmem:[#allocation7 + $0x1a0] sm:$0xff] }
 0x1c3   :  { %1049 = vmatprep.subr.mxu1 %v763_v59  ;;  %1246 = vmatprep.subr.mxu0 %v1113_v60  ;;  %v1145_v59 = vld [vmem:[#allocation7 + $0x198] sm:$0xff]  ;;  %v1144_v60 = vld [vmem:[#allocation7 + $0x190] sm:$0xff] }
 0x1c4   :  { %1050 = vmatpush2.msra.mxu1 %v762_v61  ;;  %1247 = vmatpush1.msra.mxu0 %v1112_v62  ;;  %v1143_v61 = vld [vmem:[#allocation7 + $0x188] sm:$0xff]  ;;  %v1142_v62 = vld [vmem:[#allocation7 + $0x180] sm:$0xff] }
 0x1c5   :  { %1051 = vmatprep.subr.mxu1 %v759_v63  ;;  %1248 = vmatprep.subr.mxu0 %v1111_v0  ;;  %v1141_v63 = vld [vmem:[#allocation7 + $0x178] sm:$0xff]  ;;  %v1140_v0 = vld [vmem:[#allocation7 + $0x170] sm:$0xff] }
 0x1c6   :  { %1052 = vmatpush2.msra.mxu1 %v758_v1  ;;  %1249 = vmatpush1.msra.mxu0 %v1110_v2  ;;  %v1139_v1 = vld [vmem:[#allocation7 + $0x168] sm:$0xff]  ;;  %v1188_v2 = vld [vmem:[#allocation7 + $0x2f0] sm:$0xff] }
 0x1c7   :  { %1053 = vmatprep.subr.mxu1 %v755_v3  ;;  %1250 = vmatprep.subr.mxu0 %v1109_v4  ;;  %v1187_v3 = vld [vmem:[#allocation7 + $0x2e8] sm:$0xff]  ;;  %v1186_v4 = vld [vmem:[#allocation7 + $0x2e0] sm:$0xff] }
 0x1c8   :  { %1054 = vmatpush2.msra.mxu1 %v754_v6  ;;  %1251 = vmatpush1.msra.mxu0 %v1108_v7  ;;  %v1138_v6 = vld [vmem:[#allocation7 + $0x160] sm:$0xff]  ;;  %v1185_v7 = vld [vmem:[#allocation7 + $0x2d8] sm:$0xff] }
 0x1c9   :  { %1055 = vmatprep.subr.mxu1 %v751_v8  ;;  %1252 = vmatprep.subr.mxu0 %v1107_v5  ;;  %v1137_v8 = vld [vmem:[#allocation7 + $0x158] sm:$0xff]  ;;  %v1184_v5 = vld [vmem:[#allocation7 + $0x2d0] sm:$0xff] }
 0x1ca   :  { %1056 = vmatpush2.msra.mxu1 %v750_v9  ;;  %1253 = vmatpush1.msra.mxu0 %v1106_v10  ;;  %v1136_v9 = vld [vmem:[#allocation7 + $0x150] sm:$0xff]  ;;  %v1183_v10 = vld [vmem:[#allocation7 + $0x2c8] sm:$0xff] }
 0x1cb   :  { %1057 = vmatprep.subr.mxu1 %v747_v11  ;;  %1254 = vmatprep.subr.mxu0 %v1105_v12  ;;  %v1135_v11 = vld [vmem:[#allocation7 + $0x148] sm:$0xff]  ;;  %v1182_v12 = vld [vmem:[#allocation7 + $0x2c0] sm:$0xff] }
 0x1cc   :  { %1058 = vmatpush2.msra.mxu1 %v746_v14  ;;  %1255 = vmatpush1.msra.mxu0 %v1104_v15  ;;  %v1134_v14 = vld [vmem:[#allocation7 + $0x140] sm:$0xff]  ;;  %v1181_v15 = vld [vmem:[#allocation7 + $0x2b8] sm:$0xff] }
 0x1cd   :  { %1059 = vmatprep.subr.mxu1 %v743_v17  ;;  %1256 = vmatprep.subr.mxu0 %v1103_v18  ;;  %v1133_v17 = vld [vmem:[#allocation7 + $0x138] sm:$0xff]  ;;  %v1180_v18 = vld [vmem:[#allocation7 + $0x2b0] sm:$0xff] }
 0x1ce   :  { %1060 = vmatpush2.msra.mxu1 %v742_v19  ;;  %1257 = vmatpush1.msra.mxu0 %v1102_v20  ;;  %v1132_v19 = vld [vmem:[#allocation7 + $0x130] sm:$0xff]  ;;  %v1179_v20 = vld [vmem:[#allocation7 + $0x2a8] sm:$0xff] }
 0x1cf   :  { %1061 = vmatprep.subr.mxu1 %v739_v21  ;;  %1258 = vmatprep.subr.mxu0 %v1101_v22  ;;  %v1131_v21 = vld [vmem:[#allocation7 + $0x128] sm:$0xff]  ;;  %v1178_v22 = vld [vmem:[#allocation7 + $0x2a0] sm:$0xff] }
 0x1d0   :  { %1062 = vmatpush2.msra.mxu1 %v738_v23  ;;  %1259 = vmatpush1.msra.mxu0 %v1100_v24  ;;  %v1130_v23 = vld [vmem:[#allocation7 + $0x120] sm:$0xff]  ;;  %v1177_v24 = vld [vmem:[#allocation7 + $0x298] sm:$0xff] }
 0x1d1   :  { %1063 = vmatprep.subr.mxu1 %v735_v25  ;;  %1260 = vmatprep.subr.mxu0 %v1099_v26  ;;  %v1129_v25 = vld [vmem:[#allocation7 + $0x118] sm:$0xff]  ;;  %v1176_v26 = vld [vmem:[#allocation7 + $0x290] sm:$0xff] }
 0x1d2   :  { %1064 = vmatpush2.msra.mxu1 %v734_v27  ;;  %1261 = vmatpush1.msra.mxu0 %v1098_v28  ;;  %v1128_v27 = vld [vmem:[#allocation7 + $0x110] sm:$0xff]  ;;  %v1175_v28 = vld [vmem:[#allocation7 + $0x288] sm:$0xff] }
 0x1d3   :  { %1065 = vmatprep.subr.mxu1 %v731_v29  ;;  %1262 = vmatprep.subr.mxu0 %v1097_v45  ;;  %v1127_v29 = vld [vmem:[#allocation7 + $0x108] sm:$0xff]  ;;  %v1174_v45 = vld [vmem:[#allocation7 + $0x280] sm:$0xff] }
 0x1d4   :  { %1066 = vmatpush2.msra.mxu1 %v730_v32  ;;  %1263 = vmatpush1.msra.mxu0 %v1096_v35  ;;  %v1126_v32 = vld [vmem:[#allocation7 + $0x100] sm:$0xff]  ;;  %v1173_v35 = vld [vmem:[#allocation7 + $0x278] sm:$0xff] }
 0x1d5   :  { %1067 = vmatprep.subr.mxu1 %v727_v36  ;;  %1264 = vmatprep.subr.mxu0 %v1095_v37  ;;  %v1172_v36 = vld [vmem:[#allocation7 + $0x270] sm:$0xff]  ;;  %v1171_v37 = vld [vmem:[#allocation7 + $0x268] sm:$0xff] }
 0x1d6   :  { %1068 = vmatpush2.msra.mxu1 %v726_v38  ;;  %1265 = vmatpush1.msra.mxu0 %v1094_v39  ;;  %v1170_v38 = vld [vmem:[#allocation7 + $0x260] sm:$0xff]  ;;  %v1169_v39 = vld [vmem:[#allocation7 + $0x258] sm:$0xff] }
 0x1d7   :  { %1069 = vmatprep.subr.mxu1 %v723_v33  ;;  %1266 = vmatprep.subr.mxu0 %v1157_v40  ;;  %v1168_v33 = vld [vmem:[#allocation7 + $0x250] sm:$0xff]  ;;  %v1167_v40 = vld [vmem:[#allocation7 + $0x248] sm:$0xff] }
 0x1d8   :  { %1070 = vmatpush2.msra.mxu1 %v722_v41  ;;  %1267 = vmatpush2.msra.mxu0 %v1156_v42  ;;  %v1166_v41 = vld [vmem:[#allocation7 + $0x240] sm:$0xff]  ;;  %v1165_v42 = vld [vmem:[#allocation7 + $0x238] sm:$0xff] }
 0x1d9   :  { %1071 = vmatprep.subr.mxu1 %v719_v43  ;;  %1268 = vmatprep.subr.mxu0 %v1155_v46  ;;  %v1164_v43 = vld [vmem:[#allocation7 + $0x230] sm:$0xff]  ;;  %v1163_v46 = vld [vmem:[#allocation7 + $0x228] sm:$0xff] }
 0x1da   :  { %1072 = vmatpush2.msra.mxu1 %v718_v47  ;;  %1269 = vmatpush2.msra.mxu0 %v1154_v48  ;;  %v1162_v47 = vld [vmem:[#allocation7 + $0x220] sm:$0xff]  ;;  %v1161_v48 = vld [vmem:[#allocation7 + $0x218] sm:$0xff] }
 0x1db   :  { %1073 = vmatprep.subr.mxu1 %v715_v49  ;;  %1270 = vmatprep.subr.mxu0 %v1153_v50  ;;  %v1160_v49 = vld [vmem:[#allocation7 + $0x210] sm:$0xff]  ;;  %v1159_v50 = vld [vmem:[#allocation7 + $0x208] sm:$0xff] }
 0x1dc   :  { %1074 = vmatpush2.msra.mxu1 %v714_v51  ;;  %1271 = vmatpush2.msra.mxu0 %v1152_v52  ;;  %v1158_v51 = vld [vmem:[#allocation7 + $0x200] sm:$0xff]  ;;  %v1221_v52 = vld [vmem:[#allocation7 + $0x3f8] sm:$0xff] }
 0x1dd   :  { %1076 = vmatmul.mubr.f32.vlgmr.msra.gmra.mxu1 %v1854_v44  ;;  %1272 = vmatprep.subr.mxu0 %v1151_v53  ;;  %v1189_v44 = vld [vmem:[#allocation7 + $0x2f8] sm:$0xff]  ;;  %v1220_v53 = vld [vmem:[#allocation7 + $0x3f0] sm:$0xff] }
 0x1de   :  { %1273 = vmatpush2.msra.mxu0 %v1150_v54  ;;  %1305 = vmatprep.subr.mxu1 %v1189_v44  ;;  %v1219_v54 = vld [vmem:[#allocation7 + $0x3e8] sm:$0xff] }
 0x1df   :  { %1274 = vmatprep.subr.mxu0 %v1149_v55  ;;  %1306 = vmatpush1.msra.mxu1 %v1188_v2  ;;  %v1218_v55 = vld [vmem:[#allocation7 + $0x3e0] sm:$0xff]  ;;  %v1207_v44 = vld [vmem:[#allocation7 + $0x388] sm:$0xff] }
 0x1e0   :  { %1275 = vmatpush2.msra.mxu0 %v1148_v56  ;;  %1307 = vmatprep.subr.mxu1 %v1187_v3  ;;  %v1217_v56 = vld [vmem:[#allocation7 + $0x3d8] sm:$0xff]  ;;  %v1206_v2 = vld [vmem:[#allocation7 + $0x380] sm:$0xff] }
 0x1e1   :  { %1276 = vmatprep.subr.mxu0 %v1147_v57  ;;  %1308 = vmatpush1.msra.mxu1 %v1186_v4  ;;  %v1216_v57 = vld [vmem:[#allocation7 + $0x3d0] sm:$0xff]  ;;  %v1205_v3 = vld [vmem:[#allocation7 + $0x378] sm:$0xff] }
 0x1e2   :  { %1277 = vmatpush2.msra.mxu0 %v1146_v58  ;;  %1309 = vmatprep.subr.mxu1 %v1185_v7  ;;  %v1215_v58 = vld [vmem:[#allocation7 + $0x3c8] sm:$0xff]  ;;  %v1204_v4 = vld [vmem:[#allocation7 + $0x370] sm:$0xff]  ;;  %v1202_v7 = vld [vmem:[#allocation7 + $0x360] sm:$0xff] }
 0x1e3   :  { %1278 = vmatprep.subr.mxu0 %v1145_v59  ;;  %1310 = vmatpush1.msra.mxu1 %v1184_v5  ;;  %v1214_v59 = vld [vmem:[#allocation7 + $0x3c0] sm:$0xff]  ;;  %v1200_v5 = vld [vmem:[#allocation7 + $0x350] sm:$0xff] }
 0x1e4   :  { %1279 = vmatpush2.msra.mxu0 %v1144_v60  ;;  %1311 = vmatprep.subr.mxu1 %v1183_v10  ;;  %v1213_v60 = vld [vmem:[#allocation7 + $0x3b8] sm:$0xff]  ;;  %v1198_v10 = vld [vmem:[#allocation7 + $0x340] sm:$0xff] }
 0x1e5   :  { %1280 = vmatprep.subr.mxu0 %v1143_v61  ;;  %1312 = vmatpush1.msra.mxu1 %v1182_v12  ;;  %v1212_v61 = vld [vmem:[#allocation7 + $0x3b0] sm:$0xff] }
 0x1e6   :  { %1281 = vmatpush2.msra.mxu0 %v1142_v62  ;;  %1313 = vmatprep.subr.mxu1 %v1181_v15  ;;  %v1211_v62 = vld [vmem:[#allocation7 + $0x3a8] sm:$0xff]  ;;  %v1196_v12 = vld [vmem:[#allocation7 + $0x330] sm:$0xff]  ;;  %v1194_v15 = vld [vmem:[#allocation7 + $0x320] sm:$0xff] }
 0x1e7   :  { %1282 = vmatprep.subr.mxu0 %v1141_v63  ;;  %1314 = vmatpush1.msra.mxu1 %v1180_v18  ;;  %v1210_v63 = vld [vmem:[#allocation7 + $0x3a0] sm:$0xff]  ;;  %v1192_v18 = vld [vmem:[#allocation7 + $0x310] sm:$0xff] }
 0x1e8   :  { %1283 = vmatpush2.msra.mxu0 %v1140_v0  ;;  %1315 = vmatprep.subr.mxu1 %v1179_v20  ;;  %v1209_v0 = vld [vmem:[#allocation7 + $0x398] sm:$0xff]  ;;  %v1190_v20 = vld [vmem:[#allocation7 + $0x300] sm:$0xff] }
 0x1e9   :  { %1284 = vmatprep.subr.mxu0 %v1139_v1  ;;  %1316 = vmatpush1.msra.mxu1 %v1178_v22  ;;  %v1208_v1 = vld [vmem:[#allocation7 + $0x390] sm:$0xff] }
 0x1ea   :  { %1285 = vmatpush2.msra.mxu0 %v1138_v6  ;;  %1317 = vmatprep.subr.mxu1 %v1177_v24  ;;  %v1203_v6 = vld [vmem:[#allocation7 + $0x368] sm:$0xff] }
 0x1eb   :  { %1286 = vmatprep.subr.mxu0 %v1137_v8  ;;  %1318 = vmatpush1.msra.mxu1 %v1176_v26  ;;  %v1201_v8 = vld [vmem:[#allocation7 + $0x358] sm:$0xff] }
 0x1ec   :  { %1287 = vmatpush2.msra.mxu0 %v1136_v9  ;;  %1319 = vmatprep.subr.mxu1 %v1175_v28  ;;  %v1199_v9 = vld [vmem:[#allocation7 + $0x348] sm:$0xff] }
 0x1ed   :  { %1288 = vmatprep.subr.mxu0 %v1135_v11  ;;  %1320 = vmatpush1.msra.mxu1 %v1174_v45  ;;  %v1197_v11 = vld [vmem:[#allocation7 + $0x338] sm:$0xff] }
 0x1ee   :  { %1289 = vmatpush2.msra.mxu0 %v1134_v14  ;;  %1321 = vmatprep.subr.mxu1 %v1173_v35  ;;  %v1195_v14 = vld [vmem:[#allocation7 + $0x328] sm:$0xff] }
 0x1ef   :  { %1290 = vmatprep.subr.mxu0 %v1133_v17  ;;  %1322 = vmatpush1.msra.mxu1 %v1172_v36  ;;  %v1193_v17 = vld [vmem:[#allocation7 + $0x318] sm:$0xff] }
 0x1f0   :  { %1291 = vmatpush2.msra.mxu0 %v1132_v19  ;;  %1323 = vmatprep.subr.mxu1 %v1171_v37  ;;  %v1191_v19 = vld [vmem:[#allocation7 + $0x308] sm:$0xff] }
 0x1f1   :  { %1292 = vmatprep.subr.mxu0 %v1131_v21  ;;  %1324 = vmatpush1.msra.mxu1 %v1170_v38  ;;  %v776_v21 = vld [vmem:[%s1980_s8] sm:$0xf] }
 0x1f2   :  { %1293 = vmatpush2.msra.mxu0 %v1130_v23  ;;  %1325 = vmatprep.subr.mxu1 %v1169_v39  ;;  %v781_v23 = vrot.slane %v776_v21, %v1829_v31  ;;  %v785_v24 = vrot.slane %v776_v21, %v1837_v34 }
 0x1f3   :  { %1294 = vmatprep.subr.mxu0 %v1129_v25  ;;  %1326 = vmatpush1.msra.mxu1 %v1168_v33  ;;  %v789_v33 = vrot.slane %v776_v21, %v494_v13  ;;  %v1397_v13 = vld [vmem:[%s1983_s11 + $0x78] sm:$0xff] }
 0x1f4   :  { %1295 = vmatpush2.msra.mxu0 %v1128_v27  ;;  %1327 = vmatprep.subr.mxu1 %v1167_v40  ;;  %v793_v40 = vrot.slane %v776_v21, %v498_v16  ;;  %v1412_v16 = vld [vmem:[%s1983_s11 + $0xf0] sm:$0xff] }
 0x1f5   :  { %1296 = vmatprep.subr.mxu0 %v1127_v29  ;;  %1328 = vmatpush1.msra.mxu1 %v1166_v41 }
 0x1f6   :  { %1297 = vmatpush2.msra.mxu0 %v1126_v32  ;;  %1329 = vmatprep.subr.mxu1 %v1165_v42 }
 0x1f7   :  { %1330 = vmatpush1.msra.mxu1 %v1164_v43  ;;  %1506 = vmatprep.subr.mxu0 %v1413_v30 }
 0x1f8   :  { %1331 = vmatprep.subr.mxu1 %v1163_v46 }
 0x1f9   :  { %1332 = vmatpush1.msra.mxu1 %v1162_v47 }
 0x1fa   :  { %1333 = vmatprep.subr.mxu1 %v1161_v48 }
 0x1fb   :  { %1334 = vmatpush1.msra.mxu1 %v1160_v49 }
 0x1fc   :  { %1335 = vmatprep.subr.mxu1 %v1159_v50 }
 0x1fd   :  { %1336 = vmatpush1.msra.mxu1 %v1158_v51 }
 0x1fe   :  { %1337 = vmatprep.subr.mxu1 %v1221_v52 }
 0x1ff   :  { %1338 = vmatpush2.msra.mxu1 %v1220_v53 }
 0x200   :  { %1339 = vmatprep.subr.mxu1 %v1219_v54  ;;  %v1396_v54 = vld [vmem:[%s1983_s11 + $0x70] sm:$0xff] }
 0x201   :  { %1340 = vmatpush2.msra.mxu1 %v1218_v55  ;;  %v1411_v55 = vld [vmem:[%s1983_s11 + $0xe8] sm:$0xff] }
 0x202   :  { %1341 = vmatprep.subr.mxu1 %v1217_v56  ;;  %v1395_v56 = vld [vmem:[%s1983_s11 + $0x68] sm:$0xff] }
 0x203   :  { %1342 = vmatpush2.msra.mxu1 %v1216_v57  ;;  %v1410_v57 = vld [vmem:[%s1983_s11 + $0xe0] sm:$0xff] }
 0x204   :  { %1343 = vmatprep.subr.mxu1 %v1215_v58  ;;  %v1394_v58 = vld [vmem:[%s1983_s11 + $0x60] sm:$0xff] }
 0x205   :  { %1344 = vmatpush2.msra.mxu1 %v1214_v59  ;;  %v1409_v59 = vld [vmem:[%s1983_s11 + $0xd8] sm:$0xff] }
 0x206   :  { %1345 = vmatprep.subr.mxu1 %v1213_v60  ;;  %v1393_v60 = vld [vmem:[%s1983_s11 + $0x58] sm:$0xff] }
 0x207   :  { %1346 = vmatpush2.msra.mxu1 %v1212_v61  ;;  %v1408_v61 = vld [vmem:[%s1983_s11 + $0xd0] sm:$0xff] }
 0x208   :  { %1347 = vmatprep.subr.mxu1 %v1211_v62  ;;  %v1392_v62 = vld [vmem:[%s1983_s11 + $0x50] sm:$0xff] }
 0x209   :  { %1348 = vmatpush2.msra.mxu1 %v1210_v63  ;;  %v1407_v63 = vld [vmem:[%s1983_s11 + $0xc8] sm:$0xff] }
 0x20a   :  { %1349 = vmatprep.subr.mxu1 %v1209_v0  ;;  %v1391_v0 = vld [vmem:[%s1983_s11 + $0x48] sm:$0xff] }
 0x20b   :  { %1350 = vmatpush2.msra.mxu1 %v1208_v1  ;;  %v1406_v1 = vld [vmem:[%s1983_s11 + $0xc0] sm:$0xff] }
 0x20c   :  { %1351 = vmatprep.subr.mxu1 %v1207_v44  ;;  %v1390_v44 = vld [vmem:[%s1983_s11 + $0x40] sm:$0xff] }
 0x20d   :  { %1352 = vmatpush2.msra.mxu1 %v1206_v2  ;;  %v1405_v2 = vld [vmem:[%s1983_s11 + $0xb8] sm:$0xff] }
 0x20e   :  { %1353 = vmatprep.subr.mxu1 %v1205_v3  ;;  %v1389_v3 = vld [vmem:[%s1983_s11 + $0x38] sm:$0xff] }
 0x20f   :  { %1354 = vmatpush2.msra.mxu1 %v1204_v4  ;;  %v1404_v4 = vld [vmem:[%s1983_s11 + $0xb0] sm:$0xff] }
 0x210   :  { %1355 = vmatprep.subr.mxu1 %v1203_v6  ;;  %v1388_v6 = vld [vmem:[%s1983_s11 + $0x30] sm:$0xff] }
 0x211   :  { %1356 = vmatpush2.msra.mxu1 %v1202_v7  ;;  %v1403_v7 = vld [vmem:[%s1983_s11 + $0xa8] sm:$0xff] }
 0x212   :  { %1357 = vmatprep.subr.mxu1 %v1201_v8  ;;  %v1387_v8 = vld [vmem:[%s1983_s11 + $0x28] sm:$0xff] }
 0x213   :  { %1358 = vmatpush2.msra.mxu1 %v1200_v5  ;;  %v1402_v5 = vld [vmem:[%s1983_s11 + $0xa0] sm:$0xff] }
 0x214   :  { %1359 = vmatprep.subr.mxu1 %v1199_v9  ;;  %v1386_v9 = vld [vmem:[%s1983_s11 + $0x20] sm:$0xff] }
 0x215   :  { %1360 = vmatpush2.msra.mxu1 %v1198_v10  ;;  %v1401_v10 = vld [vmem:[%s1983_s11 + $0x98] sm:$0xff] }
 0x216   :  { %1361 = vmatprep.subr.mxu1 %v1197_v11  ;;  %v1385_v11 = vld [vmem:[%s1983_s11 + $0x18] sm:$0xff] }
 0x217   :  { %1362 = vmatpush2.msra.mxu1 %v1196_v12  ;;  %v1400_v12 = vld [vmem:[%s1983_s11 + $0x90] sm:$0xff] }
 0x218   :  { %1363 = vmatprep.subr.mxu1 %v1195_v14  ;;  %v1384_v14 = vld [vmem:[%s1983_s11 + $0x10] sm:$0xff] }
 0x219   :  { %1364 = vmatpush2.msra.mxu1 %v1194_v15  ;;  %v1399_v15 = vld [vmem:[%s1983_s11 + $0x88] sm:$0xff] }
 0x21a   :  { %1365 = vmatprep.subr.mxu1 %v1193_v17  ;;  %v1383_v17 = vld [vmem:[%s1983_s11 + $0x8] sm:$0xff] }
 0x21b   :  { %1366 = vmatpush2.msra.mxu1 %v1192_v18  ;;  %v1398_v18 = vld [vmem:[%s1983_s11 + $0x80] sm:$0xff] }
 0x21c   :  { %1367 = vmatprep.subr.mxu1 %v1191_v19  ;;  %v1382_v19 = vld [vmem:[%s1983_s11] sm:$0xff] }
 0x21d   :  { %1368 = vmatpush2.msra.mxu1 %v1190_v20  ;;  %v1222_v20 = vld [vmem:[%s1982_s10] sm:$0x3] }
 0x235   :  { %v864_v22 = vpop.f32.mrf.mxu0 }
 0x236   :  { %v865_v26 = vadd.f32 %v864_v22, %v781_v23  ;;  %v1227_v22 = vrot.slane %v1222_v20, %v1829_v31  ;;  %v1231_v23 = vrot.slane %v1222_v20, %v1837_v34 }
 0x237   :  { %v866_v25 = vpop.f32.mrf.mxu0 }
 0x238   :  { %v867_v28 = vadd.f32 %v866_v25, %v785_v24 }
 0x25d   :  { %v935_v27 = vpop.f32.mrf.mxu1 }
 0x25e   :  { %v936_v29 = vadd.f32 %v935_v27, %v865_v26 }
 0x25f   :  { %v937_v45 = vpop.f32.mrf.mxu1 }
 0x260   :  { %v938_v32 = vadd.f32 %v937_v45, %v867_v28  ;;  %v1086_v35 = vmul.f32 0.01, %v936_v29  ;;  %vm1082_vm6 = vcmp.ge.f32.partialorder %v936_v29, 0.0 }
 0x262   :  { %v1087_v36 = vmul.f32 0.01, %v938_v32  ;;  %vm1083_vm7 = vcmp.ge.f32.partialorder %v938_v32, 0.0  ;;  %v1090_v38 = vsel %vm1082_vm6, %v936_v29, %v1086_v35 }
 0x264   :  { %v1091_v37 = vsel %vm1083_vm7, %v938_v32, %v1087_v36 }
 0x265   :  { %1298 = vmatprep.mubr.f32.mxu0 %v1091_v37 }
 0x266   :  { %1299 = vmatmul.mubr.f32.vlgmr.msra.gmra.mxu0 %v1090_v38 }
 0x267   :  { %1507 = vmatpush3.msra.mxu0 %v1397_v13 }
 0x268   :  { %1508 = vmatprep.subr.mxu0 %v1412_v16 }
 0x269   :  { %1509 = vmatpush3.msra.mxu0 %v1396_v54 }
 0x26a   :  { %1510 = vmatprep.subr.mxu0 %v1411_v55 }
 0x26b   :  { %1511 = vmatpush3.msra.mxu0 %v1395_v56 }
 0x26c   :  { %1512 = vmatprep.subr.mxu0 %v1410_v57 }
 0x26d   :  { %1513 = vmatpush3.msra.mxu0 %v1394_v58 }
 0x26e   :  { %1514 = vmatprep.subr.mxu0 %v1409_v59 }
 0x26f   :  { %1515 = vmatpush3.msra.mxu0 %v1393_v60 }
 0x270   :  { %1516 = vmatprep.subr.mxu0 %v1408_v61 }
 0x271   :  { %1517 = vmatpush3.msra.mxu0 %v1392_v62 }
 0x272   :  { %1518 = vmatprep.subr.mxu0 %v1407_v63 }
 0x273   :  { %1519 = vmatpush3.msra.mxu0 %v1391_v0 }
 0x274   :  { %1520 = vmatprep.subr.mxu0 %v1406_v1 }
 0x275   :  { %1521 = vmatpush3.msra.mxu0 %v1390_v44 }
 0x276   :  { %v1006_v39 = vpop.f32.mrf.mxu0  ;;  %1522 = vmatprep.subr.mxu0 %v1405_v2 }
 0x277   :  { %v1007_v42 = vadd.f32 %v1006_v39, %v789_v33  ;;  %1523 = vmatpush3.msra.mxu0 %v1389_v3  ;;  %v1505_v39 = vld [vmem:[#allocation2] ss:$0 sm:$0xff] }
 0x278   :  { %v1008_v41 = vpop.f32.mrf.mxu0  ;;  %1524 = vmatprep.subr.mxu0 %v1404_v4 }
 0x279   :  { %v1009_v46 = vadd.f32 %v1008_v41, %v793_v40  ;;  %1525 = vmatpush3.msra.mxu0 %v1388_v6 }
 0x27a   :  { %1526 = vmatprep.subr.mxu0 %v1403_v7 }
 0x27b   :  { %1527 = vmatpush3.msra.mxu0 %v1387_v8 }
 0x27c   :  { %1528 = vmatprep.subr.mxu0 %v1402_v5 }
 0x27d   :  { %1529 = vmatpush3.msra.mxu0 %v1386_v9 }
 0x27e   :  { %1530 = vmatprep.subr.mxu0 %v1401_v10 }
 0x27f   :  { %1531 = vmatpush3.msra.mxu0 %v1385_v11 }
 0x280   :  { %1532 = vmatprep.subr.mxu0 %v1400_v12 }
 0x281   :  { %1533 = vmatpush3.msra.mxu0 %v1384_v14 }
 0x282   :  { %1534 = vmatprep.subr.mxu0 %v1399_v15 }
 0x283   :  { %1535 = vmatpush3.msra.mxu0 %v1383_v17 }
 0x284   :  { %1536 = vmatprep.subr.mxu0 %v1398_v18 }
 0x285   :  { %1537 = vmatpush3.msra.mxu0 %v1382_v19 }
 0x29d   :  { %v1077_v43 = vpop.f32.mrf.mxu1 }
 0x29e   :  { %v1078_v47 = vadd.f32 %v1077_v43, %v1007_v42 }
 0x29f   :  { %v1079_v48 = vpop.f32.mrf.mxu1 }
 0x2a0   :  { %v1080_v49 = vadd.f32 %v1079_v48, %v1009_v46  ;;  %v1088_v50 = vmul.f32 0.01, %v1078_v47  ;;  %vm1084_vm8 = vcmp.ge.f32.partialorder %v1078_v47, 0.0 }
 0x2a2   :  { %v1089_v51 = vmul.f32 0.01, %v1080_v49  ;;  %vm1085_vm9 = vcmp.ge.f32.partialorder %v1080_v49, 0.0  ;;  %v1092_v53 = vsel %vm1084_vm8, %v1078_v47, %v1088_v50 }
 0x2a4   :  { %v1093_v52 = vsel %vm1085_vm9, %v1080_v49, %v1089_v51 }
 0x2a5   :  { %1369 = vmatprep.mubr.f32.mxu1 %v1093_v52 }
 0x2a6   :  { %1370 = vmatmul.mubr.f32.vlgmr.msra.gmra.mxu1 %v1092_v53 }
 0x326   :  { %v1300_v21 = vpop.f32.mrf.mxu0 }
 0x327   :  { %v1301_v25 = vadd.f32 %v1300_v21, %v1227_v22 }
 0x328   :  { %v1302_v24 = vpop.f32.mrf.mxu0 }
 0x329   :  { %v1303_v27 = vadd.f32 %v1302_v24, %v1231_v23 }
 0x366   :  { %v1371_v26 = vpop.f32.mrf.mxu1 }
 0x367   :  { %v1372_v28 = vadd.f32 %v1371_v26, %v1301_v25 }
 0x368   :  { %v1373_v29 = vpop.f32.mrf.mxu1 }
 0x369   :  { %v1374_v45 = vadd.f32 %v1373_v29, %v1303_v27  ;;  %v1378_v32 = vmul.f32 0.01, %v1372_v28  ;;  %vm1376_vm10 = vcmp.ge.f32.partialorder %v1372_v28, 0.0 }
 0x36b   :  { %v1379_v35 = vmul.f32 0.01, %v1374_v45  ;;  %vm1377_vm11 = vcmp.ge.f32.partialorder %v1374_v45, 0.0  ;;  %v1380_v37 = vsel %vm1376_vm10, %v1372_v28, %v1378_v32 }
 0x36d   :  { %v1381_v36 = vsel %vm1377_vm11, %v1374_v45, %v1379_v35 }
 0x36e   :  { %1485 = vmatprep.mubr.f32.mxu0 %v1381_v36 }
 0x36f   :  { %1486 = vmatmul.mubr.f32.vlgmr.msra.gmra.mxu0 %v1380_v37 }
 0x42f   :  { %v1538_v38 = vpop.f32.mrf.mxu0 }
 0x431   :  { %v1539_v31 = vpop.f32.mrf.mxu0 }
 0x432   :  { %v1540_v33 = vadd.f32 %v1539_v31, %v1538_v38 }
 0x434   :  { %v1488_v34 = vadd.f32 %v1540_v33, %v1505_v39 }
 0x436   :  { %1492 = vst.msk [vmem:[%s1985_s13] sm:$0xff] %vm1491_vm12, %v1488_v34 }
 0x437   :  { %1497 = vsyncpa [#allocation4], 1 }
 0x438   :  { %1498 = vsyncpa [#allocation6], 1 }

</bundles_post_ra>
